<compile_context>
chip_gen: v7x
topology: tpu7x:2x2x1
jax: 0.10.0
libtpu: 0.0.40
codegen_flags: <defaults>
</compile_context>

<pallas_src>
import jax
import jax.numpy as jnp
import numpy as np
from jax.experimental import pallas as pl
from jax.experimental.pallas import tpu as pltpu


def _round_up(n, m):
    return -(-n // m) * m


# ------------------------------ Pallas kernels ------------------------------

def _conv_pool_kernel(p_ref, w_ref, b_ref, o_ref):
    """Fused conv (im2col matmul) + bias + ReLU + 2x2/stride-2 max-pool.

    p_ref: [K, 4*Np]   im2col patches; the 4 pool-window offsets concatenated along the
                       (128-aligned, zero-padded) lane axis. K = kh*kw*cin (row order
                       (kh, kw, cin) matching the packed weights).
    w_ref: [Cout, K]   packed conv weights.
    b_ref: [Cout, 1]
    o_ref: [Cout, Np]  pooled + ReLU'd activation, columns (b, oh, ow) then pad.
    """
    npad = o_ref.shape[1]
    # Single wide MXU matmul (one weight load / fill-drain instead of four).
    z = jnp.dot(w_ref[...], p_ref[...], preferred_element_type=jnp.float32)  # [Cout, 4*Np]
    # Max over the 4 pool offsets: tile-aligned static lane slices (Np % 128 == 0).
    m = jnp.maximum(jnp.maximum(z[:, 0:npad], z[:, npad:2 * npad]),
                    jnp.maximum(z[:, 2 * npad:3 * npad], z[:, 3 * npad:4 * npad]))
    # max_j relu(z_j + b) == relu(max_j z_j + b)  (bias constant over offsets, relu monotone)
    o_ref[...] = jnp.maximum(m + b_ref[...], 0.0).astype(o_ref.dtype)


def _conv2_fc_kernel(p_ref, cw_ref, cb_ref,
                     fw1_ref, fb1_ref, fw2_ref, fb2_ref, fw3_ref, fb3_ref,
                     o_ref, h_scr, xfc_scr):
    """Fused conv2 + bias + ReLU + 2x2 pool + flatten + fc1->ReLU->fc2->ReLU->fc3.

    p_ref  : [150, 4*Np2]  pool-folded im2col patches of h1 (Np2 = round_up(B*25, 128)).
    cw_ref : [16, 150], cb_ref: [16, 1]
    fw*_ref: fc weights pre-transposed to [in, out]; fb*_ref: biases as [1, out].
    o_ref  : [B, 10]
    h_scr  : VMEM [16, Np2]  conv2 pooled activation (never leaves VMEM).
    xfc_scr: VMEM [B, 400]   flattened activation in PyTorch x.view(B, -1) order.
    """
    npad = h_scr.shape[1]
    batch = o_ref.shape[0]
    S = 25  # pooled 5x5 spatial positions per channel

    z = jnp.dot(cw_ref[...], p_ref[...], preferred_element_type=jnp.float32)  # [16, 4*Np2]
    m = jnp.maximum(jnp.maximum(z[:, 0:npad], z[:, npad:2 * npad]),
                    jnp.maximum(z[:, 2 * npad:3 * npad], z[:, 3 * npad:4 * npad]))
    h_scr[...] = jnp.maximum(m + cb_ref[...], 0.0)       # [16, Np2], cols (b, oh, ow)

    # PyTorch flatten of [B,16,5,5]: x_fc[b, c*25 + s] = h[c, b*25 + s].
    # Done as small static ref-slice copies (16*B chunks of 25 lanes) entirely in VMEM,
    # avoiding in-kernel lane-splitting reshapes/transposes.
    for b in range(batch):
        for c in range(16):
            xfc_scr[b:b + 1, c * S:(c + 1) * S] = h_scr[c:c + 1, b * S:(b + 1) * S]

    x = xfc_scr[...]                                      # [B, 400]
    a = jnp.dot(x, fw1_ref[...], preferred_element_type=jnp.float32) + fb1_ref[...]
    a = jnp.maximum(a, 0.0)
    a = jnp.dot(a, fw2_ref[...], preferred_element_type=jnp.float32) + fb2_ref[...]
    a = jnp.maximum(a, 0.0)
    out = jnp.dot(a, fw3_ref[...], preferred_element_type=jnp.float32) + fb3_ref[...]
    o_ref[...] = out.astype(o_ref.dtype)


# ------------------------------ kernel wrappers ------------------------------

def conv_pool_stage(patches, w_packed, b_col):
    """patches: [K, 4*Np], w_packed: [Cout, K], b_col: [Cout, 1] -> [Cout, Np]."""
    K, n4 = patches.shape
    npad = n4 // 4
    cout = w_packed.shape[0]
    return pl.pallas_call(
        _conv_pool_kernel,
        out_shape=jax.ShapeDtypeStruct((cout, npad), patches.dtype),
        grid=(1,),
        in_specs=[
            pl.BlockSpec((K, n4), lambda i: (0, 0)),
            pl.BlockSpec((cout, K), lambda i: (0, 0)),
            pl.BlockSpec((cout, 1), lambda i: (0, 0)),
        ],
        out_specs=pl.BlockSpec((cout, npad), lambda i: (0, 0)),
    )(patches, w_packed, b_col)


def conv2_fc_stage(patches, pp, batch):
    """patches: [150, 4*Np2]; returns logits [batch, 10]."""
    K, n4 = patches.shape
    npad = n4 // 4
    return pl.pallas_call(
        _conv2_fc_kernel,
        out_shape=jax.ShapeDtypeStruct((batch, 10), patches.dtype),
        grid=(1,),
        in_specs=[
            pl.BlockSpec((K, n4), lambda i: (0, 0)),
            pl.BlockSpec((16, K), lambda i: (0, 0)),
            pl.BlockSpec((16, 1), lambda i: (0, 0)),
            pl.BlockSpec((400, 120), lambda i: (0, 0)),
            pl.BlockSpec((1, 120), lambda i: (0, 0)),
            pl.BlockSpec((120, 84), lambda i: (0, 0)),
            pl.BlockSpec((1, 84), lambda i: (0, 0)),
            pl.BlockSpec((84, 10), lambda i: (0, 0)),
            pl.BlockSpec((1, 10), lambda i: (0, 0)),
        ],
        out_specs=pl.BlockSpec((batch, 10), lambda i: (0, 0)),
        scratch_shapes=[pltpu.VMEM((16, npad), jnp.float32),
                        pltpu.VMEM((batch, 400), jnp.float32)],
    )(patches, pp["conv2_wt"], pp["conv2_b"],
      pp["fc1_wt"], pp["fc1_b"], pp["fc2_wt"], pp["fc2_b"],
      pp["fc3_wt"], pp["fc3_b"])


# ------------------------------- glue (JAX/XLA) -------------------------------

def _pool_folded_patches(x_cfirst, k, oh, ow, n_pad):
    """Pool-folded, transposed im2col (lean XLA glue: 25 slices + 1 stack/transpose/pad).

    x_cfirst: [C, B, H, W]  ->  [k*k*C, 4*n_pad]
      rows: (kh, kw, c)                                  -- matches packed conv weights
      cols: 4 pool-offset blocks (ph, pw); each block ordered (b, oh, ow), zero-padded
            from B*oh*ow to n_pad lanes (n_pad is a multiple of 128).
    """
    C, B, H, W = x_cfirst.shape
    n = B * oh * ow
    slabs = []
    for kh in range(k):
        for kw in range(k):
            s = x_cfirst[:, :, kh:kh + 2 * oh, kw:kw + 2 * ow]    # [C, B, 2*oh, 2*ow]
            slabs.append(s.reshape(C, B, oh, 2, ow, 2))           # split spatial -> pool phase
    p = jnp.stack(slabs, axis=0)                  # [k*k, C, B, oh, 2(ph), ow, 2(pw)]
    p = jnp.transpose(p, (0, 1, 4, 6, 2, 3, 5))   # [k*k, C, 2(ph), 2(pw), B, oh, ow]
    p = p.reshape(k * k * C, 4, n)
    if n_pad > n:
        p = jnp.pad(p, ((0, 0), (0, 0), (0, n_pad - n)))
    return p.reshape(k * k * C, 4 * n_pad)


def prepare_params(p):
    """One-time host-side packing (hoisted out of the forward pass)."""
    return {
        # conv weights: [Cout, Cin, KH, KW] -> [Cout, (kh, kw, cin)]
        "conv1_wt": jnp.transpose(p["conv1_w"], (0, 2, 3, 1)).reshape(6, 75),
        "conv1_b": p["conv1_b"].reshape(6, 1),
        "conv2_wt": jnp.transpose(p["conv2_w"], (0, 2, 3, 1)).reshape(16, 150),
        "conv2_b": p["conv2_b"].reshape(16, 1),
        # fc weights pre-transposed to [in, out]; biases as row vectors
        "fc1_wt": p["fc1_w"].T, "fc1_b": p["fc1_b"].reshape(1, 120),
        "fc2_wt": p["fc2_w"].T, "fc2_b": p["fc2_b"].reshape(1, 84),
        "fc3_wt": p["fc3_w"].T, "fc3_b": p["fc3_b"].reshape(1, 10),
    }


@jax.jit
def net_forward(x_nchw, pp):
    B = x_nchw.shape[0]
    n1 = B * 14 * 14
    n1p = _round_up(n1, 128)
    n2p = _round_up(B * 5 * 5, 128)

    x_c = jnp.transpose(x_nchw, (1, 0, 2, 3))                      # [3, B, 32, 32]

    # stage 1: conv1 + ReLU + 2x2 pool                              (pallas_call #1)
    p1 = _pool_folded_patches(x_c, 5, 14, 14, n1p)                 # [75, 4*n1p]
    h1 = conv_pool_stage(p1, pp["conv1_wt"], pp["conv1_b"])        # [6, n1p]

    # stage 2: conv2 + ReLU + pool + flatten + fc1/fc2/fc3          (pallas_call #2)
    h1_img = h1[:, :n1].reshape(6, B, 14, 14)
    p2 = _pool_folded_patches(h1_img, 5, 5, 5, n2p)                # [150, 4*n2p]
    return conv2_fc_stage(p2, pp, B)                               # [B, 10]


# ----------------------------- pure-JAX reference -----------------------------

def reference_forward(x_nchw, p):
    dn = ("NCHW", "OIHW", "NCHW")
    y = jax.lax.conv_general_dilated(x_nchw, p["conv1_w"], (1, 1), "VALID",
                                     dimension_numbers=dn) + p["conv1_b"][None, :, None, None]
    y = jnp.maximum(y, 0.0)
    y = jax.lax.reduce_window(y, -jnp.inf, jax.lax.max, (1, 1, 2, 2), (1, 1, 2, 2), "VALID")
    y = jax.lax.conv_general_dilated(y, p["conv2_w"], (1, 1), "VALID",
                                     dimension_numbers=dn) + p["conv2_b"][None, :, None, None]
    y = jnp.maximum(y, 0.0)
    y = jax.lax.reduce_window(y, -jnp.inf, jax.lax.max, (1, 1, 2, 2), (1, 1, 2, 2), "VALID")
    y = y.reshape(y.shape[0], -1)
    y = jnp.maximum(y @ p["fc1_w"].T + p["fc1_b"], 0.0)
    y = jnp.maximum(y @ p["fc2_w"].T + p["fc2_b"], 0.0)
    y = y @ p["fc3_w"].T + p["fc3_b"]
    return y


# ------------------------------------ main ------------------------------------

def init_params(key):
    ks = jax.random.split(key, 10)

    def w(k, shape, fan_in):
        return (jax.random.normal(k, shape, jnp.float32) * (1.0 / np.sqrt(fan_in))).astype(jnp.float32)

    return {
        "conv1_w": w(ks[0], (6, 3, 5, 5), 3 * 5 * 5),
        "conv1_b": w(ks[1], (6,), 3 * 5 * 5),
        "conv2_w": w(ks[2], (16, 6, 5, 5), 6 * 5 * 5),
        "conv2_b": w(ks[3], (16,), 6 * 5 * 5),
        "fc1_w": w(ks[4], (120, 400), 400),   # PyTorch Linear: [out, in]
        "fc1_b": w(ks[5], (120,), 400),
        "fc2_w": w(ks[6], (84, 120), 120),
        "fc2_b": w(ks[7], (84,), 120),
        "fc3_w": w(ks[8], (10, 84), 84),
        "fc3_b": w(ks[9], (10,), 84),
    }


if __name__ == "__main__":
    key = jax.random.PRNGKey(0)
    k_x, k_p = jax.random.split(key)
    # Forward pass implies 32x32 input (two valid 5x5 convs + two 2x2 pools -> 16*5*5).
    x = jax.random.normal(k_x, (2, 3, 32, 32), jnp.float32)
    params = init_params(k_p)
    packed = jax.block_until_ready(prepare_params(params))   # one-time weight packing

    out = jax.block_until_ready(net_forward(x, packed))
    ref = jax.block_until_ready(reference_forward(x, params))

    assert out.shape == (2, 10), out.shape
    np.testing.assert_allclose(np.asarray(out), np.asarray(ref), rtol=1e-4, atol=1e-4)
    print("KERNEL_OK")
</pallas_src>

<mosaic_0001>
module attributes {stable_mosaic.version = 11 : i64} {
  func.func @_conv_pool_kernel(%arg0: i32, %arg1: memref<75x2048xf32, #tpu.memory_space<vmem>>, %arg2: memref<6x75xf32, #tpu.memory_space<vmem>>, %arg3: memref<6x1xf32, #tpu.memory_space<vmem>>, %arg4: memref<6x512xf32, #tpu.memory_space<vmem>>) attributes {dimension_semantics = [#tpu.dimension_semantics<arbitrary>], iteration_bounds = array<i64: 1>, scalar_prefetch = 0 : i64, scratch_operands = 0 : i64, tpu.core_type = #tpu.core_type<tc>, window_params = [{pipeline_mode = #tpu.pipeline_mode<synchronous>, transform_indices = @transform_0, window_bounds = array<i64: 75, 2048>}, {pipeline_mode = #tpu.pipeline_mode<synchronous>, transform_indices = @transform_1, window_bounds = array<i64: 6, 75>}, {pipeline_mode = #tpu.pipeline_mode<synchronous>, transform_indices = @transform_2, window_bounds = array<i64: 6, 1>}, {pipeline_mode = #tpu.pipeline_mode<synchronous>, transform_indices = @transform_3, window_bounds = array<i64: 6, 512>}]} {
    %c0 = arith.constant 0 : index
    %c0_0 = arith.constant 0 : index
    %0 = vector.load %arg2[%c0, %c0_0] : memref<6x75xf32, #tpu.memory_space<vmem>>, vector<6x75xf32>
    %c0_1 = arith.constant 0 : index
    %c0_2 = arith.constant 0 : index
    %1 = vector.load %arg1[%c0_1, %c0_2] : memref<75x2048xf32, #tpu.memory_space<vmem>>, vector<75x2048xf32>
    %cst = arith.constant dense<0.000000e+00> : vector<6x2048xf32>
    %2 = tpu.matmul %0, %1, %cst {dimension_numbers = #tpu.dot_dimension_numbers<[1], [0], [0], [1], [0, 0, 1, 1], [], []>} : vector<6x75xf32>, vector<75x2048xf32>, vector<6x2048xf32> -> vector<6x2048xf32>
    %3 = vector.extract_strided_slice %2 {offsets = [0, 0], sizes = [6, 512], strides = [1, 1]} : vector<6x2048xf32> to vector<6x512xf32>
    %4 = vector.extract_strided_slice %2 {offsets = [0, 512], sizes = [6, 512], strides = [1, 1]} : vector<6x2048xf32> to vector<6x512xf32>
    %5 = arith.maximumf %3, %4 : vector<6x512xf32>
    %6 = vector.extract_strided_slice %2 {offsets = [0, 1024], sizes = [6, 512], strides = [1, 1]} : vector<6x2048xf32> to vector<6x512xf32>
    %7 = vector.extract_strided_slice %2 {offsets = [0, 1536], sizes = [6, 512], strides = [1, 1]} : vector<6x2048xf32> to vector<6x512xf32>
    %8 = arith.maximumf %6, %7 : vector<6x512xf32>
    %9 = arith.maximumf %5, %8 : vector<6x512xf32>
    %c0_3 = arith.constant 0 : index
    %c0_4 = arith.constant 0 : index
    %10 = vector.load %arg3[%c0_3, %c0_4] : memref<6x1xf32, #tpu.memory_space<vmem>>, vector<6x1xf32>
    %11 = vector.broadcast %10 : vector<6x1xf32> to vector<6x512xf32>
    %12 = arith.addf %9, %11 : vector<6x512xf32>
    %cst_5 = arith.constant 0.000000e+00 : f32
    %13 = vector.broadcast %cst_5 : f32 to vector<6x512xf32>
    %14 = arith.maximumf %12, %13 : vector<6x512xf32>
    %c0_6 = arith.constant 0 : index
    %c0_7 = arith.constant 0 : index
    %15 = vector.load %arg4[%c0_6, %c0_7] : memref<6x512xf32, #tpu.memory_space<vmem>>, vector<6x512xf32>
    tpu.vector_store %arg4[%c0_6, %c0_7], %14 {strides = array<i32>} : memref<6x512xf32, #tpu.memory_space<vmem>>, vector<6x512xf32>,
    return
  }
  func.func @transform_0(%arg0: i32) -> (i32, i32) {
    %c0_i32 = arith.constant 0 : i32
    %c0_i32_0 = arith.constant 0 : i32
    %c0_i32_1 = arith.constant 0 : i32
    return %c0_i32, %c0_i32_0 : i32, i32
  }
  func.func @transform_1(%arg0: i32) -> (i32, i32) {
    %c0_i32 = arith.constant 0 : i32
    %c0_i32_0 = arith.constant 0 : i32
    %c0_i32_1 = arith.constant 0 : i32
    return %c0_i32, %c0_i32_0 : i32, i32
  }
  func.func @transform_2(%arg0: i32) -> (i32, i32) {
    %c0_i32 = arith.constant 0 : i32
    %c0_i32_0 = arith.constant 0 : i32
    %c0_i32_1 = arith.constant 0 : i32
    return %c0_i32, %c0_i32_0 : i32, i32
  }
  func.func @transform_3(%arg0: i32) -> (i32, i32) {
    %c0_i32 = arith.constant 0 : i32
    %c0_i32_0 = arith.constant 0 : i32
    %c0_i32_1 = arith.constant 0 : i32
    return %c0_i32, %c0_i32_0 : i32, i32
  }
}

module attributes {stable_mosaic.version = 11 : i64} {
  func.func @_conv2_fc_kernel(%arg0: i32, %arg1: memref<150x512xf32, #tpu.memory_space<vmem>>, %arg2: memref<16x150xf32, #tpu.memory_space<vmem>>, %arg3: memref<16x1xf32, #tpu.memory_space<vmem>>, %arg4: memref<400x120xf32, #tpu.memory_space<vmem>>, %arg5: memref<1x120xf32, #tpu.memory_space<vmem>>, %arg6: memref<120x84xf32, #tpu.memory_space<vmem>>, %arg7: memref<1x84xf32, #tpu.memory_space<vmem>>, %arg8: memref<84x10xf32, #tpu.memory_space<vmem>>, %arg9: memref<1x10xf32, #tpu.memory_space<vmem>>, %arg10: memref<2x10xf32, #tpu.memory_space<vmem>>, %arg11: memref<16x128xf32, #tpu.memory_space<vmem>>, %arg12: memref<2x400xf32, #tpu.memory_space<vmem>>) attributes {dimension_semantics = [#tpu.dimension_semantics<arbitrary>], iteration_bounds = array<i64: 1>, scalar_prefetch = 0 : i64, scratch_operands = 2 : i64, tpu.core_type = #tpu.core_type<tc>, window_params = [{pipeline_mode = #tpu.pipeline_mode<synchronous>, transform_indices = @transform_0, window_bounds = array<i64: 150, 512>}, {pipeline_mode = #tpu.pipeline_mode<synchronous>, transform_indices = @transform_1, window_bounds = array<i64: 16, 150>}, {pipeline_mode = #tpu.pipeline_mode<synchronous>, transform_indices = @transform_2, window_bounds = array<i64: 16, 1>}, {pipeline_mode = #tpu.pipeline_mode<synchronous>, transform_indices = @transform_3, window_bounds = array<i64: 400, 120>}, {pipeline_mode = #tpu.pipeline_mode<synchronous>, transform_indices = @transform_4, window_bounds = array<i64: 1, 120>}, {pipeline_mode = #tpu.pipeline_mode<synchronous>, transform_indices = @transform_5, window_bounds = array<i64: 120, 84>}, {pipeline_mode = #tpu.pipeline_mode<synchronous>, transform_indices = @transform_6, window_bounds = array<i64: 1, 84>}, {pipeline_mode = #tpu.pipeline_mode<synchronous>, transform_indices = @transform_7, window_bounds = array<i64: 84, 10>}, {pipeline_mode = #tpu.pipeline_mode<synchronous>, transform_indices = @transform_8, window_bounds = array<i64: 1, 10>}, {pipeline_mode = #tpu.pipeline_mode<synchronous>, transform_indices = @transform_9, window_bounds = array<i64: 2, 10>}]} {
    %c0 = arith.constant 0 : index
    %c0_0 = arith.constant 0 : index
    %0 = vector.load %arg2[%c0, %c0_0] : memref<16x150xf32, #tpu.memory_space<vmem>>, vector<16x150xf32>
    %c0_1 = arith.constant 0 : index
    %c0_2 = arith.constant 0 : index
    %1 = vector.load %arg1[%c0_1, %c0_2] : memref<150x512xf32, #tpu.memory_space<vmem>>, vector<150x512xf32>
    %cst = arith.constant dense<0.000000e+00> : vector<16x512xf32>
    %2 = tpu.matmul %0, %1, %cst {dimension_numbers = #tpu.dot_dimension_numbers<[1], [0], [0], [1], [0, 0, 1, 1], [], []>} : vector<16x150xf32>, vector<150x512xf32>, vector<16x512xf32> -> vector<16x512xf32>
    %3 = vector.extract_strided_slice %2 {offsets = [0, 0], sizes = [16, 128], strides = [1, 1]} : vector<16x512xf32> to vector<16x128xf32>
    %4 = vector.extract_strided_slice %2 {offsets = [0, 128], sizes = [16, 128], strides = [1, 1]} : vector<16x512xf32> to vector<16x128xf32>
    %5 = arith.maximumf %3, %4 : vector<16x128xf32>
    %6 = vector.extract_strided_slice %2 {offsets = [0, 256], sizes = [16, 128], strides = [1, 1]} : vector<16x512xf32> to vector<16x128xf32>
    %7 = vector.extract_strided_slice %2 {offsets = [0, 384], sizes = [16, 128], strides = [1, 1]} : vector<16x512xf32> to vector<16x128xf32>
    %8 = arith.maximumf %6, %7 : vector<16x128xf32>
    %9 = arith.maximumf %5, %8 : vector<16x128xf32>
    %c0_3 = arith.constant 0 : index
    %c0_4 = arith.constant 0 : index
    %10 = vector.load %arg3[%c0_3, %c0_4] : memref<16x1xf32, #tpu.memory_space<vmem>>, vector<16x1xf32>
    %11 = vector.broadcast %10 : vector<16x1xf32> to vector<16x128xf32>
    %12 = arith.addf %9, %11 : vector<16x128xf32>
    %cst_5 = arith.constant 0.000000e+00 : f32
    %13 = vector.broadcast %cst_5 : f32 to vector<16x128xf32>
    %14 = arith.maximumf %12, %13 : vector<16x128xf32>
    %c0_6 = arith.constant 0 : index
    %c0_7 = arith.constant 0 : index
    %15 = vector.load %arg11[%c0_6, %c0_7] : memref<16x128xf32, #tpu.memory_space<vmem>>, vector<16x128xf32>
    tpu.vector_store %arg11[%c0_6, %c0_7], %14 {strides = array<i32>} : memref<16x128xf32, #tpu.memory_space<vmem>>, vector<16x128xf32>,
    %c0_8 = arith.constant 0 : index
    %c0_9 = arith.constant 0 : index
    %16 = vector.load %arg11[%c0_8, %c0_9] : memref<16x128xf32, #tpu.memory_space<vmem>>, vector<1x25xf32>
    %c0_10 = arith.constant 0 : index
    %c0_11 = arith.constant 0 : index
    %17 = vector.load %arg12[%c0_10, %c0_11] : memref<2x400xf32, #tpu.memory_space<vmem>>, vector<1x25xf32>
    tpu.vector_store %arg12[%c0_10, %c0_11], %16 {strides = array<i32>} : memref<2x400xf32, #tpu.memory_space<vmem>>, vector<1x25xf32>,
    %c1 = arith.constant 1 : index
    %c0_12 = arith.constant 0 : index
    %18 = vector.load %arg11[%c1, %c0_12] : memref<16x128xf32, #tpu.memory_space<vmem>>, vector<1x25xf32>
    %c0_13 = arith.constant 0 : index
    %c25 = arith.constant 25 : index
    %19 = vector.load %arg12[%c0_13, %c25] : memref<2x400xf32, #tpu.memory_space<vmem>>, vector<1x25xf32>
    tpu.vector_store %arg12[%c0_13, %c25], %18 {strides = array<i32>} : memref<2x400xf32, #tpu.memory_space<vmem>>, vector<1x25xf32>,
    %c2 = arith.constant 2 : index
    %c0_14 = arith.constant 0 : index
    %20 = vector.load %arg11[%c2, %c0_14] : memref<16x128xf32, #tpu.memory_space<vmem>>, vector<1x25xf32>
    %c0_15 = arith.constant 0 : index
    %c50 = arith.constant 50 : index
    %21 = vector.load %arg12[%c0_15, %c50] : memref<2x400xf32, #tpu.memory_space<vmem>>, vector<1x25xf32>
    tpu.vector_store %arg12[%c0_15, %c50], %20 {strides = array<i32>} : memref<2x400xf32, #tpu.memory_space<vmem>>, vector<1x25xf32>,
    %c3 = arith.constant 3 : index
    %c0_16 = arith.constant 0 : index
    %22 = vector.load %arg11[%c3, %c0_16] : memref<16x128xf32, #tpu.memory_space<vmem>>, vector<1x25xf32>
    %c0_17 = arith.constant 0 : index
    %c75 = arith.constant 75 : index
    %23 = vector.load %arg12[%c0_17, %c75] : memref<2x400xf32, #tpu.memory_space<vmem>>, vector<1x25xf32>
    tpu.vector_store %arg12[%c0_17, %c75], %22 {strides = array<i32>} : memref<2x400xf32, #tpu.memory_space<vmem>>, vector<1x25xf32>,
    %c4 = arith.constant 4 : index
    %c0_18 = arith.constant 0 : index
    %24 = vector.load %arg11[%c4, %c0_18] : memref<16x128xf32, #tpu.memory_space<vmem>>, vector<1x25xf32>
    %c0_19 = arith.constant 0 : index
    %c100 = arith.constant 100 : index
    %25 = vector.load %arg12[%c0_19, %c100] : memref<2x400xf32, #tpu.memory_space<vmem>>, vector<1x25xf32>
    tpu.vector_store %arg12[%c0_19, %c100], %24 {strides = array<i32>} : memref<2x400xf32, #tpu.memory_space<vmem>>, vector<1x25xf32>,
    %c5 = arith.constant 5 : index
    %c0_20 = arith.constant 0 : index
    %26 = vector.load %arg11[%c5, %c0_20] : memref<16x128xf32, #tpu.memory_space<vmem>>, vector<1x25xf32>
    %c0_21 = arith.constant 0 : index
    %c125 = arith.constant 125 : index
    %27 = vector.load %arg12[%c0_21, %c125] : memref<2x400xf32, #tpu.memory_space<vmem>>, vector<1x25xf32>
    tpu.vector_store %arg12[%c0_21, %c125], %26 {strides = array<i32>} : memref<2x400xf32, #tpu.memory_space<vmem>>, vector<1x25xf32>,
    %c6 = arith.constant 6 : index
    %c0_22 = arith.constant 0 : index
    %28 = vector.load %arg11[%c6, %c0_22] : memref<16x128xf32, #tpu.memory_space<vmem>>, vector<1x25xf32>
    %c0_23 = arith.constant 0 : index
    %c150 = arith.constant 150 : index
    %29 = vector.load %arg12[%c0_23, %c150] : memref<2x400xf32, #tpu.memory_space<vmem>>, vector<1x25xf32>
    tpu.vector_store %arg12[%c0_23, %c150], %28 {strides = array<i32>} : memref<2x400xf32, #tpu.memory_space<vmem>>, vector<1x25xf32>,
    %c7 = arith.constant 7 : index
    %c0_24 = arith.constant 0 : index
    %30 = vector.load %arg11[%c7, %c0_24] : memref<16x128xf32, #tpu.memory_space<vmem>>, vector<1x25xf32>
    %c0_25 = arith.constant 0 : index
    %c175 = arith.constant 175 : index
    %31 = vector.load %arg12[%c0_25, %c175] : memref<2x400xf32, #tpu.memory_space<vmem>>, vector<1x25xf32>
    tpu.vector_store %arg12[%c0_25, %c175], %30 {strides = array<i32>} : memref<2x400xf32, #tpu.memory_space<vmem>>, vector<1x25xf32>,
    %c8 = arith.constant 8 : index
    %c0_26 = arith.constant 0 : index
    %32 = vector.load %arg11[%c8, %c0_26] : memref<16x128xf32, #tpu.memory_space<vmem>>, vector<1x25xf32>
    %c0_27 = arith.constant 0 : index
    %c200 = arith.constant 200 : index
    %33 = vector.load %arg12[%c0_27, %c200] : memref<2x400xf32, #tpu.memory_space<vmem>>, vector<1x25xf32>
    tpu.vector_store %arg12[%c0_27, %c200], %32 {strides = array<i32>} : memref<2x400xf32, #tpu.memory_space<vmem>>, vector<1x25xf32>,
    %c9 = arith.constant 9 : index
    %c0_28 = arith.constant 0 : index
    %34 = vector.load %arg11[%c9, %c0_28] : memref<16x128xf32, #tpu.memory_space<vmem>>, vector<1x25xf32>
    %c0_29 = arith.constant 0 : index
    %c225 = arith.constant 225 : index
    %35 = vector.load %arg12[%c0_29, %c225] : memref<2x400xf32, #tpu.memory_space<vmem>>, vector<1x25xf32>
    tpu.vector_store %arg12[%c0_29, %c225], %34 {strides = array<i32>} : memref<2x400xf32, #tpu.memory_space<vmem>>, vector<1x25xf32>,
    %c10 = arith.constant 10 : index
    %c0_30 = arith.constant 0 : index
    %36 = vector.load %arg11[%c10, %c0_30] : memref<16x128xf32, #tpu.memory_space<vmem>>, vector<1x25xf32>
    %c0_31 = arith.constant 0 : index
    %c250 = arith.constant 250 : index
    %37 = vector.load %arg12[%c0_31, %c250] : memref<2x400xf32, #tpu.memory_space<vmem>>, vector<1x25xf32>
    tpu.vector_store %arg12[%c0_31, %c250], %36 {strides = array<i32>} : memref<2x400xf32, #tpu.memory_space<vmem>>, vector<1x25xf32>,
    %c11 = arith.constant 11 : index
    %c0_32 = arith.constant 0 : index
    %38 = vector.load %arg11[%c11, %c0_32] : memref<16x128xf32, #tpu.memory_space<vmem>>, vector<1x25xf32>
    %c0_33 = arith.constant 0 : index
    %c275 = arith.constant 275 : index
    %39 = vector.load %arg12[%c0_33, %c275] : memref<2x400xf32, #tpu.memory_space<vmem>>, vector<1x25xf32>
    tpu.vector_store %arg12[%c0_33, %c275], %38 {strides = array<i32>} : memref<2x400xf32, #tpu.memory_space<vmem>>, vector<1x25xf32>,
    %c12 = arith.constant 12 : index
    %c0_34 = arith.constant 0 : index
    %40 = vector.load %arg11[%c12, %c0_34] : memref<16x128xf32, #tpu.memory_space<vmem>>, vector<1x25xf32>
    %c0_35 = arith.constant 0 : index
    %c300 = arith.constant 300 : index
    %41 = vector.load %arg12[%c0_35, %c300] : memref<2x400xf32, #tpu.memory_space<vmem>>, vector<1x25xf32>
    tpu.vector_store %arg12[%c0_35, %c300], %40 {strides = array<i32>} : memref<2x400xf32, #tpu.memory_space<vmem>>, vector<1x25xf32>,
    %c13 = arith.constant 13 : index
    %c0_36 = arith.constant 0 : index
    %42 = vector.load %arg11[%c13, %c0_36] : memref<16x128xf32, #tpu.memory_space<vmem>>, vector<1x25xf32>
    %c0_37 = arith.constant 0 : index
    %c325 = arith.constant 325 : index
    %43 = vector.load %arg12[%c0_37, %c325] : memref<2x400xf32, #tpu.memory_space<vmem>>, vector<1x25xf32>
    tpu.vector_store %arg12[%c0_37, %c325], %42 {strides = array<i32>} : memref<2x400xf32, #tpu.memory_space<vmem>>, vector<1x25xf32>,
    %c14 = arith.constant 14 : index
    %c0_38 = arith.constant 0 : index
    %44 = vector.load %arg11[%c14, %c0_38] : memref<16x128xf32, #tpu.memory_space<vmem>>, vector<1x25xf32>
    %c0_39 = arith.constant 0 : index
    %c350 = arith.constant 350 : index
    %45 = vector.load %arg12[%c0_39, %c350] : memref<2x400xf32, #tpu.memory_space<vmem>>, vector<1x25xf32>
    tpu.vector_store %arg12[%c0_39, %c350], %44 {strides = array<i32>} : memref<2x400xf32, #tpu.memory_space<vmem>>, vector<1x25xf32>,
    %c15 = arith.constant 15 : index
    %c0_40 = arith.constant 0 : index
    %46 = vector.load %arg11[%c15, %c0_40] : memref<16x128xf32, #tpu.memory_space<vmem>>, vector<1x25xf32>
    %c0_41 = arith.constant 0 : index
    %c375 = arith.constant 375 : index
    %47 = vector.load %arg12[%c0_41, %c375] : memref<2x400xf32, #tpu.memory_space<vmem>>, vector<1x25xf32>
    tpu.vector_store %arg12[%c0_41, %c375], %46 {strides = array<i32>} : memref<2x400xf32, #tpu.memory_space<vmem>>, vector<1x25xf32>,
    %c0_42 = arith.constant 0 : index
    %c25_43 = arith.constant 25 : index
    %48 = vector.load %arg11[%c0_42, %c25_43] : memref<16x128xf32, #tpu.memory_space<vmem>>, vector<1x25xf32>
    %c1_44 = arith.constant 1 : index
    %c0_45 = arith.constant 0 : index
    %49 = vector.load %arg12[%c1_44, %c0_45] : memref<2x400xf32, #tpu.memory_space<vmem>>, vector<1x25xf32>
    tpu.vector_store %arg12[%c1_44, %c0_45], %48 {strides = array<i32>} : memref<2x400xf32, #tpu.memory_space<vmem>>, vector<1x25xf32>,
    %c1_46 = arith.constant 1 : index
    %c25_47 = arith.constant 25 : index
    %50 = vector.load %arg11[%c1_46, %c25_47] : memref<16x128xf32, #tpu.memory_space<vmem>>, vector<1x25xf32>
    %c1_48 = arith.constant 1 : index
    %c25_49 = arith.constant 25 : index
    %51 = vector.load %arg12[%c1_48, %c25_49] : memref<2x400xf32, #tpu.memory_space<vmem>>, vector<1x25xf32>
    tpu.vector_store %arg12[%c1_48, %c25_49], %50 {strides = array<i32>} : memref<2x400xf32, #tpu.memory_space<vmem>>, vector<1x25xf32>,
    %c2_50 = arith.constant 2 : index
    %c25_51 = arith.constant 25 : index
    %52 = vector.load %arg11[%c2_50, %c25_51] : memref<16x128xf32, #tpu.memory_space<vmem>>, vector<1x25xf32>
    %c1_52 = arith.constant 1 : index
    %c50_53 = arith.constant 50 : index
    %53 = vector.load %arg12[%c1_52, %c50_53] : memref<2x400xf32, #tpu.memory_space<vmem>>, vector<1x25xf32>
    tpu.vector_store %arg12[%c1_52, %c50_53], %52 {strides = array<i32>} : memref<2x400xf32, #tpu.memory_space<vmem>>, vector<1x25xf32>,
    %c3_54 = arith.constant 3 : index
    %c25_55 = arith.constant 25 : index
    %54 = vector.load %arg11[%c3_54, %c25_55] : memref<16x128xf32, #tpu.memory_space<vmem>>, vector<1x25xf32>
    %c1_56 = arith.constant 1 : index
    %c75_57 = arith.constant 75 : index
    %55 = vector.load %arg12[%c1_56, %c75_57] : memref<2x400xf32, #tpu.memory_space<vmem>>, vector<1x25xf32>
    tpu.vector_store %arg12[%c1_56, %c75_57], %54 {strides = array<i32>} : memref<2x400xf32, #tpu.memory_space<vmem>>, vector<1x25xf32>,
    %c4_58 = arith.constant 4 : index
    %c25_59 = arith.constant 25 : index
    %56 = vector.load %arg11[%c4_58, %c25_59] : memref<16x128xf32, #tpu.memory_space<vmem>>, vector<1x25xf32>
    %c1_60 = arith.constant 1 : index
    %c100_61 = arith.constant 100 : index
    %57 = vector.load %arg12[%c1_60, %c100_61] : memref<2x400xf32, #tpu.memory_space<vmem>>, vector<1x25xf32>
    tpu.vector_store %arg12[%c1_60, %c100_61], %56 {strides = array<i32>} : memref<2x400xf32, #tpu.memory_space<vmem>>, vector<1x25xf32>,
    %c5_62 = arith.constant 5 : index
    %c25_63 = arith.constant 25 : index
    %58 = vector.load %arg11[%c5_62, %c25_63] : memref<16x128xf32, #tpu.memory_space<vmem>>, vector<1x25xf32>
    %c1_64 = arith.constant 1 : index
    %c125_65 = arith.constant 125 : index
    %59 = vector.load %arg12[%c1_64, %c125_65] : memref<2x400xf32, #tpu.memory_space<vmem>>, vector<1x25xf32>
    tpu.vector_store %arg12[%c1_64, %c125_65], %58 {strides = array<i32>} : memref<2x400xf32, #tpu.memory_space<vmem>>, vector<1x25xf32>,
    %c6_66 = arith.constant 6 : index
    %c25_67 = arith.constant 25 : index
    %60 = vector.load %arg11[%c6_66, %c25_67] : memref<16x128xf32, #tpu.memory_space<vmem>>, vector<1x25xf32>
    %c1_68 = arith.constant 1 : index
    %c150_69 = arith.constant 150 : index
    %61 = vector.load %arg12[%c1_68, %c150_69] : memref<2x400xf32, #tpu.memory_space<vmem>>, vector<1x25xf32>
    tpu.vector_store %arg12[%c1_68, %c150_69], %60 {strides = array<i32>} : memref<2x400xf32, #tpu.memory_space<vmem>>, vector<1x25xf32>,
    %c7_70 = arith.constant 7 : index
    %c25_71 = arith.constant 25 : index
    %62 = vector.load %arg11[%c7_70, %c25_71] : memref<16x128xf32, #tpu.memory_space<vmem>>, vector<1x25xf32>
    %c1_72 = arith.constant 1 : index
    %c175_73 = arith.constant 175 : index
    %63 = vector.load %arg12[%c1_72, %c175_73] : memref<2x400xf32, #tpu.memory_space<vmem>>, vector<1x25xf32>
    tpu.vector_store %arg12[%c1_72, %c175_73], %62 {strides = array<i32>} : memref<2x400xf32, #tpu.memory_space<vmem>>, vector<1x25xf32>,
    %c8_74 = arith.constant 8 : index
    %c25_75 = arith.constant 25 : index
    %64 = vector.load %arg11[%c8_74, %c25_75] : memref<16x128xf32, #tpu.memory_space<vmem>>, vector<1x25xf32>
    %c1_76 = arith.constant 1 : index
    %c200_77 = arith.constant 200 : index
    %65 = vector.load %arg12[%c1_76, %c200_77] : memref<2x400xf32, #tpu.memory_space<vmem>>, vector<1x25xf32>
    tpu.vector_store %arg12[%c1_76, %c200_77], %64 {strides = array<i32>} : memref<2x400xf32, #tpu.memory_space<vmem>>, vector<1x25xf32>,
    %c9_78 = arith.constant 9 : index
    %c25_79 = arith.constant 25 : index
    %66 = vector.load %arg11[%c9_78, %c25_79] : memref<16x128xf32, #tpu.memory_space<vmem>>, vector<1x25xf32>
    %c1_80 = arith.constant 1 : index
    %c225_81 = arith.constant 225 : index
    %67 = vector.load %arg12[%c1_80, %c225_81] : memref<2x400xf32, #tpu.memory_space<vmem>>, vector<1x25xf32>
    tpu.vector_store %arg12[%c1_80, %c225_81], %66 {strides = array<i32>} : memref<2x400xf32, #tpu.memory_space<vmem>>, vector<1x25xf32>,
    %c10_82 = arith.constant 10 : index
    %c25_83 = arith.constant 25 : index
    %68 = vector.load %arg11[%c10_82, %c25_83] : memref<16x128xf32, #tpu.memory_space<vmem>>, vector<1x25xf32>
    %c1_84 = arith.constant 1 : index
    %c250_85 = arith.constant 250 : index
    %69 = vector.load %arg12[%c1_84, %c250_85] : memref<2x400xf32, #tpu.memory_space<vmem>>, vector<1x25xf32>
    tpu.vector_store %arg12[%c1_84, %c250_85], %68 {strides = array<i32>} : memref<2x400xf32, #tpu.memory_space<vmem>>, vector<1x25xf32>,
    %c11_86 = arith.constant 11 : index
    %c25_87 = arith.constant 25 : index
    %70 = vector.load %arg11[%c11_86, %c25_87] : memref<16x128xf32, #tpu.memory_space<vmem>>, vector<1x25xf32>
    %c1_88 = arith.constant 1 : index
    %c275_89 = arith.constant 275 : index
    %71 = vector.load %arg12[%c1_88, %c275_89] : memref<2x400xf32, #tpu.memory_space<vmem>>, vector<1x25xf32>
    tpu.vector_store %arg12[%c1_88, %c275_89], %70 {strides = array<i32>} : memref<2x400xf32, #tpu.memory_space<vmem>>, vector<1x25xf32>,
    %c12_90 = arith.constant 12 : index
    %c25_91 = arith.constant 25 : index
    %72 = vector.load %arg11[%c12_90, %c25_91] : memref<16x128xf32, #tpu.memory_space<vmem>>, vector<1x25xf32>
    %c1_92 = arith.constant 1 : index
    %c300_93 = arith.constant 300 : index
    %73 = vector.load %arg12[%c1_92, %c300_93] : memref<2x400xf32, #tpu.memory_space<vmem>>, vector<1x25xf32>
    tpu.vector_store %arg12[%c1_92, %c300_93], %72 {strides = array<i32>} : memref<2x400xf32, #tpu.memory_space<vmem>>, vector<1x25xf32>,
    %c13_94 = arith.constant 13 : index
    %c25_95 = arith.constant 25 : index
    %74 = vector.load %arg11[%c13_94, %c25_95] : memref<16x128xf32, #tpu.memory_space<vmem>>, vector<1x25xf32>
    %c1_96 = arith.constant 1 : index
    %c325_97 = arith.constant 325 : index
    %75 = vector.load %arg12[%c1_96, %c325_97] : memref<2x400xf32, #tpu.memory_space<vmem>>, vector<1x25xf32>
    tpu.vector_store %arg12[%c1_96, %c325_97], %74 {strides = array<i32>} : memref<2x400xf32, #tpu.memory_space<vmem>>, vector<1x25xf32>,
    %c14_98 = arith.constant 14 : index
    %c25_99 = arith.constant 25 : index
    %76 = vector.load %arg11[%c14_98, %c25_99] : memref<16x128xf32, #tpu.memory_space<vmem>>, vector<1x25xf32>
    %c1_100 = arith.constant 1 : index
    %c350_101 = arith.constant 350 : index
    %77 = vector.load %arg12[%c1_100, %c350_101] : memref<2x400xf32, #tpu.memory_space<vmem>>, vector<1x25xf32>
    tpu.vector_store %arg12[%c1_100, %c350_101], %76 {strides = array<i32>} : memref<2x400xf32, #tpu.memory_space<vmem>>, vector<1x25xf32>,
    %c15_102 = arith.constant 15 : index
    %c25_103 = arith.constant 25 : index
    %78 = vector.load %arg11[%c15_102, %c25_103] : memref<16x128xf32, #tpu.memory_space<vmem>>, vector<1x25xf32>
    %c1_104 = arith.constant 1 : index
    %c375_105 = arith.constant 375 : index
    %79 = vector.load %arg12[%c1_104, %c375_105] : memref<2x400xf32, #tpu.memory_space<vmem>>, vector<1x25xf32>
    tpu.vector_store %arg12[%c1_104, %c375_105], %78 {strides = array<i32>} : memref<2x400xf32, #tpu.memory_space<vmem>>, vector<1x25xf32>,
    %c0_106 = arith.constant 0 : index
    %c0_107 = arith.constant 0 : index
    %80 = vector.load %arg12[%c0_106, %c0_107] : memref<2x400xf32, #tpu.memory_space<vmem>>, vector<2x400xf32>
    %c0_108 = arith.constant 0 : index
    %c0_109 = arith.constant 0 : index
    %81 = vector.load %arg4[%c0_108, %c0_109] : memref<400x120xf32, #tpu.memory_space<vmem>>, vector<400x120xf32>
    %cst_110 = arith.constant dense<0.000000e+00> : vector<2x120xf32>
    %82 = tpu.matmul %80, %81, %cst_110 {dimension_numbers = #tpu.dot_dimension_numbers<[1], [0], [0], [1], [0, 0, 1, 1], [], []>} : vector<2x400xf32>, vector<400x120xf32>, vector<2x120xf32> -> vector<2x120xf32>
    %c0_111 = arith.constant 0 : index
    %c0_112 = arith.constant 0 : index
    %83 = vector.load %arg5[%c0_111, %c0_112] : memref<1x120xf32, #tpu.memory_space<vmem>>, vector<1x120xf32>
    %84 = vector.broadcast %83 : vector<1x120xf32> to vector<2x120xf32>
    %85 = arith.addf %82, %84 : vector<2x120xf32>
    %cst_113 = arith.constant 0.000000e+00 : f32
    %86 = vector.broadcast %cst_113 : f32 to vector<2x120xf32>
    %87 = arith.maximumf %85, %86 : vector<2x120xf32>
    %c0_114 = arith.constant 0 : index
    %c0_115 = arith.constant 0 : index
    %88 = vector.load %arg6[%c0_114, %c0_115] : memref<120x84xf32, #tpu.memory_space<vmem>>, vector<120x84xf32>
    %cst_116 = arith.constant dense<0.000000e+00> : vector<2x84xf32>
    %89 = tpu.matmul %87, %88, %cst_116 {dimension_numbers = #tpu.dot_dimension_numbers<[1], [0], [0], [1], [0, 0, 1, 1], [], []>} : vector<2x120xf32>, vector<120x84xf32>, vector<2x84xf32> -> vector<2x84xf32>
    %c0_117 = arith.constant 0 : index
    %c0_118 = arith.constant 0 : index
    %90 = vector.load %arg7[%c0_117, %c0_118] : memref<1x84xf32, #tpu.memory_space<vmem>>, vector<1x84xf32>
    %91 = vector.broadcast %90 : vector<1x84xf32> to vector<2x84xf32>
    %92 = arith.addf %89, %91 : vector<2x84xf32>
    %cst_119 = arith.constant 0.000000e+00 : f32
    %93 = vector.broadcast %cst_119 : f32 to vector<2x84xf32>
    %94 = arith.maximumf %92, %93 : vector<2x84xf32>
    %c0_120 = arith.constant 0 : index
    %c0_121 = arith.constant 0 : index
    %95 = vector.load %arg8[%c0_120, %c0_121] : memref<84x10xf32, #tpu.memory_space<vmem>>, vector<84x10xf32>
    %cst_122 = arith.constant dense<0.000000e+00> : vector<2x10xf32>
    %96 = tpu.matmul %94, %95, %cst_122 {dimension_numbers = #tpu.dot_dimension_numbers<[1], [0], [0], [1], [0, 0, 1, 1], [], []>} : vector<2x84xf32>, vector<84x10xf32>, vector<2x10xf32> -> vector<2x10xf32>
    %c0_123 = arith.constant 0 : index
    %c0_124 = arith.constant 0 : index
    %97 = vector.load %arg9[%c0_123, %c0_124] : memref<1x10xf32, #tpu.memory_space<vmem>>, vector<1x10xf32>
    %98 = vector.broadcast %97 : vector<1x10xf32> to vector<2x10xf32>
    %99 = arith.addf %96, %98 : vector<2x10xf32>
    %c0_125 = arith.constant 0 : index
    %c0_126 = arith.constant 0 : index
    %100 = vector.load %arg10[%c0_125, %c0_126] : memref<2x10xf32, #tpu.memory_space<vmem>>, vector<2x10xf32>
    tpu.vector_store %arg10[%c0_125, %c0_126], %99 {strides = array<i32>} : memref<2x10xf32, #tpu.memory_space<vmem>>, vector<2x10xf32>,
    return
  }
  func.func @transform_0(%arg0: i32) -> (i32, i32) {
    %c0_i32 = arith.constant 0 : i32
    %c0_i32_0 = arith.constant 0 : i32
    %c0_i32_1 = arith.constant 0 : i32
    return %c0_i32, %c0_i32_0 : i32, i32
  }
  func.func @transform_1(%arg0: i32) -> (i32, i32) {
    %c0_i32 = arith.constant 0 : i32
    %c0_i32_0 = arith.constant 0 : i32
    %c0_i32_1 = arith.constant 0 : i32
    return %c0_i32, %c0_i32_0 : i32, i32
  }
  func.func @transform_2(%arg0: i32) -> (i32, i32) {
    %c0_i32 = arith.constant 0 : i32
    %c0_i32_0 = arith.constant 0 : i32
    %c0_i32_1 = arith.constant 0 : i32
    return %c0_i32, %c0_i32_0 : i32, i32
  }
  func.func @transform_3(%arg0: i32) -> (i32, i32) {
    %c0_i32 = arith.constant 0 : i32
    %c0_i32_0 = arith.constant 0 : i32
    %c0_i32_1 = arith.constant 0 : i32
    return %c0_i32, %c0_i32_0 : i32, i32
  }
  func.func @transform_4(%arg0: i32) -> (i32, i32) {
    %c0_i32 = arith.constant 0 : i32
    %c0_i32_0 = arith.constant 0 : i32
    %c0_i32_1 = arith.constant 0 : i32
    return %c0_i32, %c0_i32_0 : i32, i32
  }
  func.func @transform_5(%arg0: i32) -> (i32, i32) {
    %c0_i32 = arith.constant 0 : i32
    %c0_i32_0 = arith.constant 0 : i32
    %c0_i32_1 = arith.constant 0 : i32
    return %c0_i32, %c0_i32_0 : i32, i32
  }
  func.func @transform_6(%arg0: i32) -> (i32, i32) {
    %c0_i32 = arith.constant 0 : i32
    %c0_i32_0 = arith.constant 0 : i32
    %c0_i32_1 = arith.constant 0 : i32
    return %c0_i32, %c0_i32_0 : i32, i32
  }
  func.func @transform_7(%arg0: i32) -> (i32, i32) {
    %c0_i32 = arith.constant 0 : i32
    %c0_i32_0 = arith.constant 0 : i32
    %c0_i32_1 = arith.constant 0 : i32
    return %c0_i32, %c0_i32_0 : i32, i32
  }
  func.func @transform_8(%arg0: i32) -> (i32, i32) {
    %c0_i32 = arith.constant 0 : i32
    %c0_i32_0 = arith.constant 0 : i32
    %c0_i32_1 = arith.constant 0 : i32
    return %c0_i32, %c0_i32_0 : i32, i32
  }
  func.func @transform_9(%arg0: i32) -> (i32, i32) {
    %c0_i32 = arith.constant 0 : i32
    %c0_i32_0 = arith.constant 0 : i32
    %c0_i32_1 = arith.constant 0 : i32
    return %c0_i32, %c0_i32_0 : i32, i32
  }
}

</mosaic_0001>

<bundles_post_ra>
// kernel: net_forward.2
= control target key start
LH: loop header
LB: loop body
LE: loop exit
PB: predicated region body
PF: predicated region fallthrough
CT: control target
= control target key end

     0   :  { %v1034_v3 = vmov 0.0   ;;  %v1035_v8 = vmov 0   ;;  %vm179_vm0 = vcmask 1042432   ;;  %vm1036_vm1 = vmmov 1   ;;  %s1617_s0 = inlined_call_operand.vmem [shape: f32[75,2048], index: 0, kind: input, shape index: {}]   ;;  %s1618_s1 = inlined_call_operand.vmem [shape: f32[6,75], index: 1, kind: input, shape index: {}]   ;;  %s1619_s2 = inlined_call_operand.vmem [shape: f32[6,1], index: 2, kind: input, shape index: {}]   ;;  %s1620_s3 = inlined_call_operand.vmem [shape: f32[6,512], index: 3, kind: output, shape index: {}]  }
   0x1   :  { %v16_v0 = vld [vmem:[%s1617_s0 + $0x8] sm:$0xff]  ;;  %v18_v2 = vld [vmem:[%s1617_s0 + $0x18] sm:$0xff]  ;;  %292 = vmatprep.mubr.f32.mxu0 %v1034_v3  ;;  %363 = vmatprep.mubr.f32.mxu1 %v1034_v3  ;;  %v15_v6 = vld [vmem:[%s1617_s0] sm:$0xff]  ;;  %vm175_vm3 = vcmask 613376  }
   0x2   :  { %v32_v1 = vld [vmem:[%s1617_s0 + $0x88] sm:$0xff]  ;;  %v34_v5 = vld [vmem:[%s1617_s0 + $0x98] sm:$0xff]  ;;  %v31_v7 = vld [vmem:[%s1617_s0 + $0x80] sm:$0xff]  ;;  %1033 = vset.pattern.permute.xlu0 %v1035_v8 }
   0x3   :  { %v854_v4 = vpack.c.bf16 %v32_v1, %v16_v0  ;;  %v876_v9 = vpack.c.bf16 %v34_v5, %v18_v2  ;;  %v856_v10 = vpack.c.bf16 %v31_v7, %v15_v6  ;;  %v17_v11 = vld [vmem:[%s1617_s0 + $0x10] sm:$0xff]  ;;  %v48_v13 = vld [vmem:[%s1617_s0 + $0x108] sm:$0xff]  ;;  %v50_v16 = vld [vmem:[%s1617_s0 + $0x118] sm:$0xff] }
   0x4   :  { %v33_v12 = vld [vmem:[%s1617_s0 + $0x90] sm:$0xff]  ;;  %v64_v15 = vld [vmem:[%s1617_s0 + $0x188] sm:$0xff]  ;;  %v66_v17 = vld [vmem:[%s1617_s0 + $0x198] sm:$0xff] }
   0x5   :  { %855 = vmatprep.subr.bf16.mxu0 %v854_v4  ;;  %v878_v14 = vpack.c.bf16 %v33_v12, %v17_v11  ;;  %877 = vmatprep.subr.bf16.mxu1 %v876_v9  ;;  %v858_v18 = vpack.c.bf16 %v64_v15, %v48_v13  ;;  %v880_v19 = vpack.c.bf16 %v66_v17, %v50_v16  ;;  %v47_v20 = vld [vmem:[%s1617_s0 + $0x100] sm:$0xff]  ;;  %v49_v22 = vld [vmem:[%s1617_s0 + $0x110] sm:$0xff]  ;;  %v80_v25 = vld [vmem:[%s1617_s0 + $0x208] sm:$0xff] }
   0x6   :  { %857 = vmatpush1.bf16.msra.mxu0 %v856_v10  ;;  %v63_v21 = vld [vmem:[%s1617_s0 + $0x180] sm:$0xff]  ;;  %v65_v24 = vld [vmem:[%s1617_s0 + $0x190] sm:$0xff]  ;;  %v96_v26 = vld [vmem:[%s1617_s0 + $0x288] sm:$0xff] }
   0x7   :  { %879 = vmatpush1.bf16.msra.mxu1 %v878_v14  ;;  %v860_v23 = vpack.c.bf16 %v63_v21, %v47_v20  ;;  %859 = vmatprep.subr.bf16.mxu0 %v858_v18  ;;  %v882_v27 = vpack.c.bf16 %v65_v24, %v49_v22  ;;  %v862_v28 = vpack.c.bf16 %v96_v26, %v80_v25  ;;  %v82_v29 = vld [vmem:[%s1617_s0 + $0x218] sm:$0xff]  ;;  %v79_v31 = vld [vmem:[%s1617_s0 + $0x200] sm:$0xff]  ;;  %v81_v34 = vld [vmem:[%s1617_s0 + $0x210] sm:$0xff] }
   0x8   :  { %881 = vmatprep.subr.bf16.mxu1 %v880_v19  ;;  %v98_v30 = vld [vmem:[%s1617_s0 + $0x298] sm:$0xff]  ;;  %v95_v33 = vld [vmem:[%s1617_s0 + $0x280] sm:$0xff]  ;;  %v97_v35 = vld [vmem:[%s1617_s0 + $0x290] sm:$0xff] }
   0x9   :  { %v884_v32 = vpack.c.bf16 %v98_v30, %v82_v29  ;;  %v864_v36 = vpack.c.bf16 %v95_v33, %v79_v31  ;;  %v112_v37 = vld [vmem:[%s1617_s0 + $0x308] sm:$0xff]  ;;  %v114_v39 = vld [vmem:[%s1617_s0 + $0x318] sm:$0xff]  ;;  %v886_v40 = vpack.c.bf16 %v97_v35, %v81_v34  ;;  %v111_v43 = vld [vmem:[%s1617_s0 + $0x300] sm:$0xff] }
   0xa   :  { %861 = vmatpush1.bf16.msra.mxu0 %v860_v23  ;;  %v128_v38 = vld [vmem:[%s1617_s0 + $0x388] sm:$0xff]  ;;  %v130_v42 = vld [vmem:[%s1617_s0 + $0x398] sm:$0xff]  ;;  %v127_v44 = vld [vmem:[%s1617_s0 + $0x380] sm:$0xff] }
   0xb   :  { %883 = vmatpush1.bf16.msra.mxu1 %v882_v27  ;;  %863 = vmatprep.subr.bf16.mxu0 %v862_v28  ;;  %v866_v41 = vpack.c.bf16 %v128_v38, %v112_v37  ;;  %v888_v45 = vpack.c.bf16 %v130_v42, %v114_v39  ;;  %v113_v46 = vld [vmem:[%s1617_s0 + $0x310] sm:$0xff]  ;;  %v144_v48 = vld [vmem:[%s1617_s0 + $0x408] sm:$0xff]  ;;  %v146_v50 = vld [vmem:[%s1617_s0 + $0x418] sm:$0xff]  ;;  %v868_v51 = vpack.c.bf16 %v127_v44, %v111_v43 }
   0xc   :  { %885 = vmatprep.subr.bf16.mxu1 %v884_v32  ;;  %v129_v47 = vld [vmem:[%s1617_s0 + $0x390] sm:$0xff]  ;;  %v160_v49 = vld [vmem:[%s1617_s0 + $0x488] sm:$0x7]  ;;  %vm1164_vm2 = vmpackc.low %vm179_vm0, %vm1036_vm1 }
   0xd   :  { %v162_v53 = vld [vmem:[%s1617_s0 + $0x498] sm:$0x7]  ;;  %v890_v54 = vpack.c.bf16 %v129_v47, %v113_v46  ;;  %v870_v55 = vpack.c.bf16 %v160_v49, %v144_v48  ;;  %v143_v56 = vld [vmem:[%s1617_s0 + $0x400] sm:$0xff]  ;;  %v145_v58 = vld [vmem:[%s1617_s0 + $0x410] sm:$0xff] }
   0xe   :  { %865 = vmatpush1.bf16.msra.mxu0 %v864_v36  ;;  %v159_v57 = vld [vmem:[%s1617_s0 + $0x480] sm:$0x7]  ;;  %v892_v59 = vpack.c.bf16 %v162_v53, %v146_v50  ;;  %v161_v60 = vld [vmem:[%s1617_s0 + $0x490] sm:$0x7]  ;;  %v20_v61 = vld [vmem:[%s1617_s0 + $0x28] sm:$0xff] }
   0xf   :  { %887 = vmatpush1.bf16.msra.mxu1 %v886_v40  ;;  %867 = vmatprep.subr.bf16.mxu0 %v866_v41  ;;  %v36_v62 = vld [vmem:[%s1617_s0 + $0xa8] sm:$0xff]  ;;  %v22_v63 = vld [vmem:[%s1617_s0 + $0x38] sm:$0xff]  ;;  %v873_v1 = vpack.c.bf16 %v159_v57, %v143_v56  ;;  %v895_v2 = vpack.c.bf16 %v161_v60, %v145_v58  ;;  %v19_v5 = vld [vmem:[%s1617_s0 + $0x20] sm:$0xff] }
  0x10   :  { %889 = vmatprep.subr.bf16.mxu1 %v888_v45  ;;  %v38_v0 = vld [vmem:[%s1617_s0 + $0xb8] sm:$0xff]  ;;  %v898_v4 = vpack.c.bf16 %v36_v62, %v20_v61  ;;  %v35_v6 = vld [vmem:[%s1617_s0 + $0xa0] sm:$0xff]  ;;  %v21_v7 = vld [vmem:[%s1617_s0 + $0x30] sm:$0xff] }
  0x11   :  { %v920_v8 = vpack.c.bf16 %v38_v0, %v22_v63  ;;  %v37_v9 = vld [vmem:[%s1617_s0 + $0xb0] sm:$0xff]  ;;  %v52_v10 = vld [vmem:[%s1617_s0 + $0x128] sm:$0xff]  ;;  %v54_v12 = vld [vmem:[%s1617_s0 + $0x138] sm:$0xff]  ;;  %v900_v15 = vpack.c.bf16 %v35_v6, %v19_v5 }
  0x12   :  { %869 = vmatpush1.bf16.msra.mxu0 %v868_v51  ;;  %v68_v11 = vld [vmem:[%s1617_s0 + $0x1a8] sm:$0xff]  ;;  %v70_v13 = vld [vmem:[%s1617_s0 + $0x1b8] sm:$0xff]  ;;  %v1228_v14 = vld [vmem:[%s1618_s1] sm:$0x3f]  ;;  %v922_v16 = vpack.c.bf16 %v37_v9, %v21_v7 }
  0x13   :  { %891 = vmatpush1.bf16.msra.mxu1 %v890_v54  ;;  %872 = vmatprep.subr.msk.bf16.mxu0 %vm1164_vm2, %v870_v55  ;;  %v902_v17 = vpack.c.bf16 %v68_v11, %v52_v10  ;;  %v51_v18 = vld [vmem:[%s1617_s0 + $0x120] sm:$0xff]  ;;  %v53_v20 = vld [vmem:[%s1617_s0 + $0x130] sm:$0xff]  ;;  %v924_v21 = vpack.c.bf16 %v70_v13, %v54_v12  ;;  %v84_v23 = vld [vmem:[%s1617_s0 + $0x228] sm:$0xff] }
  0x14   :  { %894 = vmatprep.subr.msk.bf16.mxu1 %vm1164_vm2, %v892_v59  ;;  %v67_v19 = vld [vmem:[%s1617_s0 + $0x1a0] sm:$0xff]  ;;  %v69_v22 = vld [vmem:[%s1617_s0 + $0x1b0] sm:$0xff]  ;;  %v100_v24 = vld [vmem:[%s1617_s0 + $0x2a8] sm:$0xff] }
  0x15   :  { %v86_v25 = vld [vmem:[%s1617_s0 + $0x238] sm:$0xff]  ;;  %v904_v27 = vpack.c.bf16 %v67_v19, %v51_v18  ;;  %v926_v28 = vpack.c.bf16 %v69_v22, %v53_v20  ;;  %v906_v29 = vpack.c.bf16 %v100_v24, %v84_v23  ;;  %v83_v30 = vld [vmem:[%s1617_s0 + $0x220] sm:$0xff]  ;;  %v85_v32 = vld [vmem:[%s1617_s0 + $0x230] sm:$0xff] }
  0x16   :  { %875 = vmatpush1.bf16.msk.msra.mxu0 %vm1164_vm2, %v873_v1  ;;  %v102_v26 = vld [vmem:[%s1617_s0 + $0x2b8] sm:$0xff]  ;;  %v99_v31 = vld [vmem:[%s1617_s0 + $0x2a0] sm:$0xff]  ;;  %v101_v34 = vld [vmem:[%s1617_s0 + $0x2b0] sm:$0xff] }
  0x17   :  { %897 = vmatpush1.bf16.msk.msra.mxu1 %vm1164_vm2, %v895_v2  ;;  %899 = vmatprep.subr.bf16.mxu0 %v898_v4  ;;  %v928_v33 = vpack.c.bf16 %v102_v26, %v86_v25  ;;  %v116_v35 = vld [vmem:[%s1617_s0 + $0x328] sm:$0xff]  ;;  %v118_v37 = vld [vmem:[%s1617_s0 + $0x338] sm:$0xff]  ;;  %v908_v39 = vpack.c.bf16 %v99_v31, %v83_v30  ;;  %v930_v40 = vpack.c.bf16 %v101_v34, %v85_v32  ;;  %v115_v42 = vld [vmem:[%s1617_s0 + $0x320] sm:$0xff] }
  0x18   :  { %921 = vmatprep.subr.bf16.mxu1 %v920_v8  ;;  %v132_v36 = vld [vmem:[%s1617_s0 + $0x3a8] sm:$0xff]  ;;  %v134_v38 = vld [vmem:[%s1617_s0 + $0x3b8] sm:$0xff]  ;;  %v131_v43 = vld [vmem:[%s1617_s0 + $0x3a0] sm:$0xff] }
  0x19   :  { %832 = vmatmul.mubr.msk.f32.vlgmr.msra.gmra.mrb[0].mxu0 %vm175_vm3, %v1228_v14  ;;  %v910_v41 = vpack.c.bf16 %v132_v36, %v116_v35  ;;  %v117_v44 = vld [vmem:[%s1617_s0 + $0x330] sm:$0xff]  ;;  %v932_v45 = vpack.c.bf16 %v134_v38, %v118_v37  ;;  %v148_v47 = vld [vmem:[%s1617_s0 + $0x428] sm:$0xff]  ;;  %v150_v49 = vld [vmem:[%s1617_s0 + $0x438] sm:$0xff]  ;;  %v912_v51 = vpack.c.bf16 %v131_v43, %v115_v42 }
  0x1a   :  { %835 = vmatmul.mubr.msk.f32.vlgmr.msra.gmra.mrb[0].mxu1 %vm175_vm3, %v1228_v14  ;;  %901 = vmatpush1.bf16.msra.mxu0 %v900_v15  ;;  %v133_v46 = vld [vmem:[%s1617_s0 + $0x3b0] sm:$0xff]  ;;  %v164_v48 = vld [vmem:[%s1617_s0 + $0x4a8] sm:$0x7]  ;;  %v166_v50 = vld [vmem:[%s1617_s0 + $0x4b8] sm:$0x7] }
  0x1b   :  { %923 = vmatpush1.bf16.msra.mxu1 %v922_v16  ;;  %903 = vmatprep.subr.bf16.mxu0 %v902_v17  ;;  %v934_v53 = vpack.c.bf16 %v133_v46, %v117_v44  ;;  %v914_v54 = vpack.c.bf16 %v164_v48, %v148_v47  ;;  %v147_v55 = vld [vmem:[%s1617_s0 + $0x420] sm:$0xff]  ;;  %v149_v57 = vld [vmem:[%s1617_s0 + $0x430] sm:$0xff]  ;;  %v936_v58 = vpack.c.bf16 %v166_v50, %v150_v49  ;;  %v24_v60 = vld [vmem:[%s1617_s0 + $0x48] sm:$0xff] }
  0x1c   :  { %925 = vmatprep.subr.bf16.mxu1 %v924_v21  ;;  %434 = vmatprep.mubr.f32.mxu0 %v1034_v3  ;;  %v163_v56 = vld [vmem:[%s1617_s0 + $0x4a0] sm:$0x7]  ;;  %v165_v59 = vld [vmem:[%s1617_s0 + $0x4b0] sm:$0x7]  ;;  %v40_v61 = vld [vmem:[%s1617_s0 + $0xc8] sm:$0xff] }
  0x1d   :  { %505 = vmatprep.mubr.f32.mxu1 %v1034_v3  ;;  %v26_v62 = vld [vmem:[%s1617_s0 + $0x58] sm:$0xff]  ;;  %v917_v0 = vpack.c.bf16 %v163_v56, %v147_v55  ;;  %v939_v1 = vpack.c.bf16 %v165_v59, %v149_v57  ;;  %v942_v2 = vpack.c.bf16 %v40_v61, %v24_v60  ;;  %v23_v4 = vld [vmem:[%s1617_s0 + $0x40] sm:$0xff]  ;;  %v25_v6 = vld [vmem:[%s1617_s0 + $0x50] sm:$0xff] }
  0x1e   :  { %905 = vmatpush1.bf16.msra.mxu0 %v904_v27  ;;  %v42_v63 = vld [vmem:[%s1617_s0 + $0xd8] sm:$0xff]  ;;  %v39_v5 = vld [vmem:[%s1617_s0 + $0xc0] sm:$0xff]  ;;  %v41_v8 = vld [vmem:[%s1617_s0 + $0xd0] sm:$0xff] }
  0x1f   :  { %927 = vmatpush1.bf16.msra.mxu1 %v926_v28  ;;  %907 = vmatprep.subr.bf16.mxu0 %v906_v29  ;;  %v964_v7 = vpack.c.bf16 %v42_v63, %v26_v62  ;;  %v56_v9 = vld [vmem:[%s1617_s0 + $0x148] sm:$0xff]  ;;  %v58_v11 = vld [vmem:[%s1617_s0 + $0x158] sm:$0xff]  ;;  %v944_v13 = vpack.c.bf16 %v39_v5, %v23_v4  ;;  %v966_v15 = vpack.c.bf16 %v41_v8, %v25_v6  ;;  %v55_v17 = vld [vmem:[%s1617_s0 + $0x140] sm:$0xff] }
  0x20   :  { %929 = vmatprep.subr.bf16.mxu1 %v928_v33  ;;  %v72_v10 = vld [vmem:[%s1617_s0 + $0x1c8] sm:$0xff]  ;;  %v74_v12 = vld [vmem:[%s1617_s0 + $0x1d8] sm:$0xff]  ;;  %v71_v18 = vld [vmem:[%s1617_s0 + $0x1c0] sm:$0xff] }
  0x21   :  { %v946_v16 = vpack.c.bf16 %v72_v10, %v56_v9  ;;  %v57_v19 = vld [vmem:[%s1617_s0 + $0x150] sm:$0xff]  ;;  %v968_v20 = vpack.c.bf16 %v74_v12, %v58_v11  ;;  %v88_v22 = vld [vmem:[%s1617_s0 + $0x248] sm:$0xff]  ;;  %v90_v24 = vld [vmem:[%s1617_s0 + $0x258] sm:$0xff]  ;;  %v948_v26 = vpack.c.bf16 %v71_v18, %v55_v17 }
  0x22   :  { %909 = vmatpush1.bf16.msra.mxu0 %v908_v39  ;;  %v73_v21 = vld [vmem:[%s1617_s0 + $0x1d0] sm:$0xff]  ;;  %v104_v23 = vld [vmem:[%s1617_s0 + $0x2c8] sm:$0xff]  ;;  %v106_v25 = vld [vmem:[%s1617_s0 + $0x2d8] sm:$0xff] }
  0x23   :  { %931 = vmatpush1.bf16.msra.mxu1 %v930_v40  ;;  %911 = vmatprep.subr.bf16.mxu0 %v910_v41  ;;  %v970_v27 = vpack.c.bf16 %v73_v21, %v57_v19  ;;  %v950_v28 = vpack.c.bf16 %v104_v23, %v88_v22  ;;  %v87_v29 = vld [vmem:[%s1617_s0 + $0x240] sm:$0xff]  ;;  %v89_v31 = vld [vmem:[%s1617_s0 + $0x250] sm:$0xff]  ;;  %v972_v32 = vpack.c.bf16 %v106_v25, %v90_v24  ;;  %v120_v34 = vld [vmem:[%s1617_s0 + $0x348] sm:$0xff] }
  0x24   :  { %933 = vmatprep.subr.bf16.mxu1 %v932_v45  ;;  %v103_v30 = vld [vmem:[%s1617_s0 + $0x2c0] sm:$0xff]  ;;  %v105_v33 = vld [vmem:[%s1617_s0 + $0x2d0] sm:$0xff]  ;;  %v136_v35 = vld [vmem:[%s1617_s0 + $0x3c8] sm:$0xff] }
  0x25   :  { %v122_v36 = vld [vmem:[%s1617_s0 + $0x358] sm:$0xff]  ;;  %v952_v38 = vpack.c.bf16 %v103_v30, %v87_v29  ;;  %v974_v39 = vpack.c.bf16 %v105_v33, %v89_v31  ;;  %v954_v40 = vpack.c.bf16 %v136_v35, %v120_v34  ;;  %v119_v41 = vld [vmem:[%s1617_s0 + $0x340] sm:$0xff]  ;;  %v121_v43 = vld [vmem:[%s1617_s0 + $0x350] sm:$0xff] }
  0x26   :  { %913 = vmatpush1.bf16.msra.mxu0 %v912_v51  ;;  %v138_v37 = vld [vmem:[%s1617_s0 + $0x3d8] sm:$0xff]  ;;  %v135_v42 = vld [vmem:[%s1617_s0 + $0x3c0] sm:$0xff]  ;;  %v137_v45 = vld [vmem:[%s1617_s0 + $0x3d0] sm:$0xff] }
  0x27   :  { %935 = vmatpush1.bf16.msra.mxu1 %v934_v53  ;;  %916 = vmatprep.subr.msk.bf16.mxu0 %vm1164_vm2, %v914_v54  ;;  %v976_v44 = vpack.c.bf16 %v138_v37, %v122_v36  ;;  %v152_v46 = vld [vmem:[%s1617_s0 + $0x448] sm:$0xff]  ;;  %v154_v48 = vld [vmem:[%s1617_s0 + $0x458] sm:$0xff]  ;;  %v956_v50 = vpack.c.bf16 %v135_v42, %v119_v41  ;;  %v151_v51 = vld [vmem:[%s1617_s0 + $0x440] sm:$0xff]  ;;  %v978_v53 = vpack.c.bf16 %v137_v45, %v121_v43 }
  0x28   :  { %938 = vmatprep.subr.msk.bf16.mxu1 %vm1164_vm2, %v936_v58  ;;  %v168_v47 = vld [vmem:[%s1617_s0 + $0x4c8] sm:$0x7]  ;;  %v170_v49 = vld [vmem:[%s1617_s0 + $0x4d8] sm:$0x7]  ;;  %v167_v55 = vld [vmem:[%s1617_s0 + $0x4c0] sm:$0x7] }
  0x29   :  { %v958_v54 = vpack.c.bf16 %v168_v47, %v152_v46  ;;  %v153_v56 = vld [vmem:[%s1617_s0 + $0x450] sm:$0xff]  ;;  %v980_v58 = vpack.c.bf16 %v170_v49, %v154_v48  ;;  %v28_v59 = vld [vmem:[%s1617_s0 + $0x68] sm:$0xff]  ;;  %v808_v61 = vld [vmem:[%s1619_s2] sm:$0x3f] }
  0x2a   :  { %919 = vmatpush1.bf16.msk.msra.mxu0 %vm1164_vm2, %v917_v0  ;;  %v169_v57 = vld [vmem:[%s1617_s0 + $0x4d0] sm:$0x7]  ;;  %v44_v60 = vld [vmem:[%s1617_s0 + $0xe8] sm:$0xff]  ;;  %v30_v62 = vld [vmem:[%s1617_s0 + $0x78] sm:$0xff]  ;;  %811 = vperm.xlu0 %1033, %v808_v61   ;;  %v961_v0 = vpack.c.bf16 %v167_v55, %v151_v51 }
  0x2b   :  { %941 = vmatpush1.bf16.msk.msra.mxu1 %vm1164_vm2, %v939_v1  ;;  %943 = vmatprep.subr.bf16.mxu0 %v942_v2  ;;  %v46_v63 = vld [vmem:[%s1617_s0 + $0xf8] sm:$0xff]  ;;  %v983_v1 = vpack.c.bf16 %v169_v57, %v153_v56  ;;  %v986_v2 = vpack.c.bf16 %v44_v60, %v28_v59  ;;  %v27_v4 = vld [vmem:[%s1617_s0 + $0x60] sm:$0xff]  ;;  %v29_v6 = vld [vmem:[%s1617_s0 + $0x70] sm:$0xff] }
  0x2c   :  { %965 = vmatprep.subr.bf16.mxu1 %v964_v7  ;;  %v43_v5 = vld [vmem:[%s1617_s0 + $0xe0] sm:$0xff]  ;;  %v1008_v7 = vpack.c.bf16 %v46_v63, %v30_v62  ;;  %v45_v8 = vld [vmem:[%s1617_s0 + $0xf0] sm:$0xff]  ;;  %v60_v9 = vld [vmem:[%s1617_s0 + $0x168] sm:$0xff] }
  0x2d   :  { %838 = vmatmul.mubr.msk.f32.vlgmr.msra.gmra.mrb[2].mxu0 %vm175_vm3, %v1228_v14  ;;  %v76_v10 = vld [vmem:[%s1617_s0 + $0x1e8] sm:$0xff]  ;;  %v62_v11 = vld [vmem:[%s1617_s0 + $0x178] sm:$0xff]  ;;  %v59_v17 = vld [vmem:[%s1617_s0 + $0x160] sm:$0xff] }
  0x2e   :  { %841 = vmatmul.mubr.msk.f32.vlgmr.msra.gmra.mrb[2].mxu1 %vm175_vm3, %v1228_v14  ;;  %945 = vmatpush1.bf16.msra.mxu0 %v944_v13  ;;  %v78_v12 = vld [vmem:[%s1617_s0 + $0x1f8] sm:$0xff]  ;;  %v988_v13 = vpack.c.bf16 %v43_v5, %v27_v4  ;;  %v75_v18 = vld [vmem:[%s1617_s0 + $0x1e0] sm:$0xff]  ;;  %v61_v19 = vld [vmem:[%s1617_s0 + $0x170] sm:$0xff] }
  0x2f   :  { %967 = vmatpush1.bf16.msra.mxu1 %v966_v15  ;;  %947 = vmatprep.subr.bf16.mxu0 %v946_v16  ;;  %v1010_v15 = vpack.c.bf16 %v45_v8, %v29_v6  ;;  %v990_v16 = vpack.c.bf16 %v76_v10, %v60_v9  ;;  %v77_v21 = vld [vmem:[%s1617_s0 + $0x1f0] sm:$0xff]  ;;  %v92_v22 = vld [vmem:[%s1617_s0 + $0x268] sm:$0xff]  ;;  %v94_v24 = vld [vmem:[%s1617_s0 + $0x278] sm:$0xff] }
  0x30   :  { %969 = vmatprep.subr.bf16.mxu1 %v968_v20  ;;  %576 = vmatprep.mubr.f32.mxu0 %v1034_v3  ;;  %v1012_v20 = vpack.c.bf16 %v78_v12, %v62_v11  ;;  %v108_v23 = vld [vmem:[%s1617_s0 + $0x2e8] sm:$0xff]  ;;  %v110_v25 = vld [vmem:[%s1617_s0 + $0x2f8] sm:$0xff]  ;;  %v91_v29 = vld [vmem:[%s1617_s0 + $0x260] sm:$0xff] }
  0x31   :  { %647 = vmatprep.mubr.f32.mxu1 %v1034_v3  ;;  %v107_v30 = vld [vmem:[%s1617_s0 + $0x2e0] sm:$0xff]  ;;  %v93_v31 = vld [vmem:[%s1617_s0 + $0x270] sm:$0xff]  ;;  %v124_v34 = vld [vmem:[%s1617_s0 + $0x368] sm:$0xff] }
  0x32   :  { %949 = vmatpush1.bf16.msra.mxu0 %v948_v26  ;;  %v992_v26 = vpack.c.bf16 %v75_v18, %v59_v17  ;;  %v109_v33 = vld [vmem:[%s1617_s0 + $0x2f0] sm:$0xff]  ;;  %v140_v35 = vld [vmem:[%s1617_s0 + $0x3e8] sm:$0xff]  ;;  %v126_v36 = vld [vmem:[%s1617_s0 + $0x378] sm:$0xff] }
  0x33   :  { %971 = vmatpush1.bf16.msra.mxu1 %v970_v27  ;;  %951 = vmatprep.subr.bf16.mxu0 %v950_v28  ;;  %v1014_v27 = vpack.c.bf16 %v77_v21, %v61_v19  ;;  %v994_v28 = vpack.c.bf16 %v108_v23, %v92_v22  ;;  %v142_v37 = vld [vmem:[%s1617_s0 + $0x3f8] sm:$0xff]  ;;  %v123_v41 = vld [vmem:[%s1617_s0 + $0x360] sm:$0xff]  ;;  %v125_v43 = vld [vmem:[%s1617_s0 + $0x370] sm:$0xff] }
  0x34   :  { %973 = vmatprep.subr.bf16.mxu1 %v972_v32  ;;  %v1016_v32 = vpack.c.bf16 %v110_v25, %v94_v24  ;;  %v139_v42 = vld [vmem:[%s1617_s0 + $0x3e0] sm:$0xff]  ;;  %v156_v45 = vld [vmem:[%s1617_s0 + $0x468] sm:$0xff]  ;;  %v158_v47 = vld [vmem:[%s1617_s0 + $0x478] sm:$0xff] }
  0x35   :  { %v172_v46 = vld [vmem:[%s1617_s0 + $0x4e8] sm:$0x7]  ;;  %v174_v48 = vld [vmem:[%s1617_s0 + $0x4f8] sm:$0x7]  ;;  %v1000_v49 = vpack.c.bf16 %v139_v42, %v123_v41  ;;  %v157_v56 = vld [vmem:[%s1617_s0 + $0x470] sm:$0xff] }
  0x36   :  { %953 = vmatpush1.bf16.msra.mxu0 %v952_v38  ;;  %v996_v38 = vpack.c.bf16 %v107_v30, %v91_v29  ;;  %v1002_v51 = vpack.c.bf16 %v172_v46, %v156_v45  ;;  %v1024_v55 = vpack.c.bf16 %v174_v48, %v158_v47  ;;  %v173_v57 = vld [vmem:[%s1617_s0 + $0x4f0] sm:$0x7] }
  0x37   :  { %975 = vmatpush1.bf16.msra.mxu1 %v974_v39  ;;  %955 = vmatprep.subr.bf16.mxu0 %v954_v40  ;;  %v1018_v39 = vpack.c.bf16 %v109_v33, %v93_v31  ;;  %v998_v40 = vpack.c.bf16 %v140_v35, %v124_v34  ;;  %v1027_v59 = vpack.c.bf16 %v173_v57, %v157_v56 }
  0x38   :  { %977 = vmatprep.subr.bf16.mxu1 %v976_v44  ;;  %v141_v44 = vld [vmem:[%s1617_s0 + $0x3f0] sm:$0xff] }
  0x3a   :  { %957 = vmatpush1.bf16.msra.mxu0 %v956_v50  ;;  %v1022_v50 = vpack.c.bf16 %v141_v44, %v125_v43 }
  0x3b   :  { %979 = vmatpush1.bf16.msra.mxu1 %v978_v53  ;;  %960 = vmatprep.subr.msk.bf16.mxu0 %vm1164_vm2, %v958_v54  ;;  %v155_v53 = vld [vmem:[%s1617_s0 + $0x460] sm:$0xff] }
  0x3c   :  { %982 = vmatprep.subr.msk.bf16.mxu1 %vm1164_vm2, %v980_v58  ;;  %v171_v54 = vld [vmem:[%s1617_s0 + $0x4e0] sm:$0x7] }
  0x3d   :  { %v1005_v58 = vpack.c.bf16 %v171_v54, %v155_v53 }
  0x3e   :  { %963 = vmatpush1.bf16.msk.msra.mxu0 %vm1164_vm2, %v961_v0 }
  0x3f   :  { %985 = vmatpush1.bf16.msk.msra.mxu1 %vm1164_vm2, %v983_v1  ;;  %987 = vmatprep.subr.bf16.mxu0 %v986_v2 }
  0x40   :  { %1009 = vmatprep.subr.bf16.mxu1 %v1008_v7 }
  0x41   :  { %844 = vmatmul.mubr.msk.f32.vlgmr.msra.gmra.mrb[4].mxu0 %vm175_vm3, %v1228_v14 }
  0x42   :  { %847 = vmatmul.mubr.msk.f32.vlgmr.msra.gmra.mrb[4].mxu1 %vm175_vm3, %v1228_v14  ;;  %989 = vmatpush1.bf16.msra.mxu0 %v988_v13 }
  0x43   :  { %1011 = vmatpush1.bf16.msra.mxu1 %v1010_v15  ;;  %991 = vmatprep.subr.bf16.mxu0 %v990_v16 }
  0x44   :  { %1013 = vmatprep.subr.bf16.mxu1 %v1012_v20  ;;  %718 = vmatprep.mubr.f32.mxu0 %v1034_v3 }
  0x45   :  { %789 = vmatprep.mubr.f32.mxu1 %v1034_v3  ;;  %v1020_v3 = vpack.c.bf16 %v142_v37, %v126_v36 }
  0x46   :  { %993 = vmatpush1.bf16.msra.mxu0 %v992_v26 }
  0x47   :  { %1015 = vmatpush1.bf16.msra.mxu1 %v1014_v27  ;;  %995 = vmatprep.subr.bf16.mxu0 %v994_v28 }
  0x48   :  { %1017 = vmatprep.subr.bf16.mxu1 %v1016_v32 }
  0x4a   :  { %997 = vmatpush1.bf16.msra.mxu0 %v996_v38 }
  0x4b   :  { %1019 = vmatpush1.bf16.msra.mxu1 %v1018_v39  ;;  %999 = vmatprep.subr.bf16.mxu0 %v998_v40 }
  0x4c   :  { %1021 = vmatprep.subr.bf16.mxu1 %v1020_v3 }
  0x4e   :  { %1001 = vmatpush1.bf16.msra.mxu0 %v1000_v49 }
  0x4f   :  { %1023 = vmatpush1.bf16.msra.mxu1 %v1022_v50  ;;  %1004 = vmatprep.subr.msk.bf16.mxu0 %vm1164_vm2, %v1002_v51 }
  0x50   :  { %1026 = vmatprep.subr.msk.bf16.mxu1 %vm1164_vm2, %v1024_v55 }
  0x52   :  { %1007 = vmatpush1.bf16.msk.msra.mxu0 %vm1164_vm2, %v1005_v58 }
  0x53   :  { %1029 = vmatpush1.bf16.msk.msra.mxu1 %vm1164_vm2, %v1027_v59 }
  0x55   :  { %850 = vmatmul.mubr.msk.f32.vlgmr.msra.gmra.mrb[6].mxu0 %vm175_vm3, %v1228_v14 }
  0x56   :  { %853 = vmatmul.mubr.msk.f32.vlgmr.msra.gmra.mrb[6].mxu1 %vm175_vm3, %v1228_v14 }
  0xa9   :  { %v812_v19 = vpop.permute.xlu0 %811 }
  0xec   :  { %v294_v60 = vpop.f32.mrb[0].mxu0 }
  0xed   :  { %v365_v61 = vpop.f32.mrb[0].mxu1  ;;  %v296_v62 = vpop.f32.mrb[1].mxu0 }
  0xee   :  { %v367_v63 = vpop.f32.mrb[1].mxu1 }
 0x100   :  { %v436_v0 = vpop.f32.mrb[2].mxu0 }
 0x101   :  { %v796_v1 = vmax.f32 %v294_v60, %v436_v0  ;;  %v507_v2 = vpop.f32.mrb[2].mxu1  ;;  %v438_v4 = vpop.f32.mrb[3].mxu0 }
 0x102   :  { %v798_v5 = vmax.f32 %v365_v61, %v507_v2  ;;  %v797_v6 = vmax.f32 %v296_v62, %v438_v4  ;;  %v509_v7 = vpop.f32.mrb[3].mxu1 }
 0x103   :  { %v799_v8 = vmax.f32 %v367_v63, %v509_v7 }
 0x114   :  { %v578_v52 = vpop.f32.mrb[4].mxu0 }
 0x115   :  { %v649_v9 = vpop.f32.mrb[4].mxu1  ;;  %v580_v10 = vpop.f32.mrb[5].mxu0 }
 0x116   :  { %v651_v11 = vpop.f32.mrb[5].mxu1 }
 0x128   :  { %v720_v12 = vpop.f32.mrb[6].mxu0 }
 0x129   :  { %v800_v13 = vmax.f32 %v578_v52, %v720_v12  ;;  %v791_v15 = vpop.f32.mrb[6].mxu1  ;;  %v722_v14 = vpop.f32.mrb[7].mxu0 }
 0x12a   :  { %v802_v16 = vmax.f32 %v649_v9, %v791_v15  ;;  %v801_v17 = vmax.f32 %v580_v10, %v722_v14  ;;  %v793_v18 = vpop.f32.mrb[7].mxu1 }
 0x12b   :  { %v804_v20 = vmax.f32 %v796_v1, %v800_v13  ;;  %v803_v21 = vmax.f32 %v651_v11, %v793_v18 }
 0x12c   :  { %v806_v22 = vmax.f32 %v798_v5, %v802_v16  ;;  %v805_v23 = vmax.f32 %v797_v6, %v801_v17 }
 0x12d   :  { %v807_v24 = vmax.f32 %v799_v8, %v803_v21  ;;  %v814_v25 = vadd.f32 %v812_v19, %v804_v20 }
 0x12e   :  { %v815_v26 = vadd.f32 %v812_v19, %v805_v23  ;;  %v816_v27 = vadd.f32 %v812_v19, %v806_v22 }
 0x12f   :  { %v817_v28 = vadd.f32 %v812_v19, %v807_v24  ;;  %v818_v29 = vmax.f32 %v814_v25, 0.0 }
 0x130   :  { %v819_v30 = vmax.f32 %v815_v26, 0.0  ;;  %v820_v31 = vmax.f32 %v816_v27, 0.0 }
 0x131   :  { %v821_v32 = vmax.f32 %v817_v28, 0.0  ;;  %822 = vst [vmem:[%s1620_s3] sm:$0x3f] %v818_v29 }
 0x132   :  { %823 = vst [vmem:[%s1620_s3 + $0x8] sm:$0x3f] %v819_v30  ;;  %824 = vst [vmem:[%s1620_s3 + $0x10] sm:$0x3f] %v820_v31 }
 0x133   :  { %825 = vst [vmem:[%s1620_s3 + $0x18] sm:$0x3f] %v821_v32 }

// kernel: net_forward.3
= control target key start
LH: loop header
LB: loop body
LE: loop exit
PB: predicated region body
PF: predicated region fallthrough
CT: control target
= control target key end

     0   :  { %v1558_v7 = vmov 0   ;;  %vm113_vm0 = vcmask 179200   ;;  %s2194_s0 = inlined_call_operand.vmem [shape: f32[150,512], index: 0, kind: input, shape index: {}]   ;;  %s2195_s1 = inlined_call_operand.vmem [shape: f32[16,150], index: 1, kind: input, shape index: {}]   ;;  %s2196_s2 = inlined_call_operand.vmem [shape: f32[16,1], index: 2, kind: input, shape index: {}]   ;;  %s2197_s3 = inlined_call_operand.vmem [shape: f32[400,120], index: 3, kind: input, shape index: {}]   ;;  %s2198_s4 = inlined_call_operand.vmem [shape: f32[1,120], index: 4, kind: input, shape index: {}]   ;;  %s2199_s5 = inlined_call_operand.vmem [shape: f32[120,84], index: 5, kind: input, shape index: {}]   ;;  %s2200_s6 = inlined_call_operand.vmem [shape: f32[1,84], index: 6, kind: input, shape index: {}]   ;;  %s2201_s7 = inlined_call_operand.vmem [shape: f32[84,10], index: 7, kind: input, shape index: {}]   ;;  %s2202_s8 = inlined_call_operand.vmem [shape: f32[1,10], index: 8, kind: input, shape index: {}]   ;;  %s2203_s9 = inlined_call_operand.hbm [shape: f32[2,10], index: 9, kind: output, shape index: {}]  }
   0x1   :  { %v38_v0 = vld [vmem:[%s2194_s0 + $0x8] sm:$0xff]  ;;  %v40_v2 = vld [vmem:[%s2194_s0 + $0x18] sm:$0xff]  ;;  %v37_v5 = vld [vmem:[%s2194_s0] sm:$0xff]  ;;  %1532 = vset.pattern.permute.xlu0 %v1558_v7 }
   0x2   :  { %v42_v1 = vld [vmem:[%s2194_s0 + $0x28] sm:$0xff]  ;;  %v44_v4 = vld [vmem:[%s2194_s0 + $0x38] sm:$0xff]  ;;  %v41_v6 = vld [vmem:[%s2194_s0 + $0x20] sm:$0xff] }
   0x3   :  { %v1343_v3 = vpack.c.bf16 %v42_v1, %v38_v0  ;;  %v1379_v8 = vpack.c.bf16 %v44_v4, %v40_v2  ;;  %v1345_v9 = vpack.c.bf16 %v41_v6, %v37_v5  ;;  %v39_v10 = vld [vmem:[%s2194_s0 + $0x10] sm:$0xff]  ;;  %v46_v12 = vld [vmem:[%s2194_s0 + $0x48] sm:$0xff]  ;;  %v48_v15 = vld [vmem:[%s2194_s0 + $0x58] sm:$0xff] }
   0x4   :  { %v43_v11 = vld [vmem:[%s2194_s0 + $0x30] sm:$0xff]  ;;  %v50_v14 = vld [vmem:[%s2194_s0 + $0x68] sm:$0xff]  ;;  %v52_v16 = vld [vmem:[%s2194_s0 + $0x78] sm:$0xff] }
   0x5   :  { %1344 = vmatprep.subr.bf16.mxu0 %v1343_v3  ;;  %v1381_v13 = vpack.c.bf16 %v43_v11, %v39_v10  ;;  %1380 = vmatprep.subr.bf16.mxu1 %v1379_v8  ;;  %v1347_v17 = vpack.c.bf16 %v50_v14, %v46_v12  ;;  %v1383_v18 = vpack.c.bf16 %v52_v16, %v48_v15  ;;  %v45_v19 = vld [vmem:[%s2194_s0 + $0x40] sm:$0xff]  ;;  %v47_v21 = vld [vmem:[%s2194_s0 + $0x50] sm:$0xff]  ;;  %v54_v24 = vld [vmem:[%s2194_s0 + $0x88] sm:$0xff] }
   0x6   :  { %1346 = vmatpush1.bf16.msra.mxu0 %v1345_v9  ;;  %v49_v20 = vld [vmem:[%s2194_s0 + $0x60] sm:$0xff]  ;;  %v51_v23 = vld [vmem:[%s2194_s0 + $0x70] sm:$0xff]  ;;  %v58_v25 = vld [vmem:[%s2194_s0 + $0xa8] sm:$0xff] }
   0x7   :  { %1382 = vmatpush1.bf16.msra.mxu1 %v1381_v13  ;;  %v1349_v22 = vpack.c.bf16 %v49_v20, %v45_v19  ;;  %1348 = vmatprep.subr.bf16.mxu0 %v1347_v17  ;;  %v1385_v26 = vpack.c.bf16 %v51_v23, %v47_v21  ;;  %v1351_v27 = vpack.c.bf16 %v58_v25, %v54_v24  ;;  %v56_v28 = vld [vmem:[%s2194_s0 + $0x98] sm:$0xff]  ;;  %v53_v30 = vld [vmem:[%s2194_s0 + $0x80] sm:$0xff]  ;;  %v55_v33 = vld [vmem:[%s2194_s0 + $0x90] sm:$0xff] }
   0x8   :  { %1384 = vmatprep.subr.bf16.mxu1 %v1383_v18  ;;  %v60_v29 = vld [vmem:[%s2194_s0 + $0xb8] sm:$0xff]  ;;  %v57_v32 = vld [vmem:[%s2194_s0 + $0xa0] sm:$0xff]  ;;  %v59_v34 = vld [vmem:[%s2194_s0 + $0xb0] sm:$0xff] }
   0x9   :  { %v1387_v31 = vpack.c.bf16 %v60_v29, %v56_v28  ;;  %v1353_v35 = vpack.c.bf16 %v57_v32, %v53_v30  ;;  %v62_v36 = vld [vmem:[%s2194_s0 + $0xc8] sm:$0xff]  ;;  %v64_v38 = vld [vmem:[%s2194_s0 + $0xd8] sm:$0xff]  ;;  %v1389_v39 = vpack.c.bf16 %v59_v34, %v55_v33  ;;  %v61_v42 = vld [vmem:[%s2194_s0 + $0xc0] sm:$0xff] }
   0xa   :  { %1350 = vmatpush1.bf16.msra.mxu0 %v1349_v22  ;;  %v66_v37 = vld [vmem:[%s2194_s0 + $0xe8] sm:$0xff]  ;;  %v68_v41 = vld [vmem:[%s2194_s0 + $0xf8] sm:$0xff]  ;;  %v65_v43 = vld [vmem:[%s2194_s0 + $0xe0] sm:$0xff] }
   0xb   :  { %1386 = vmatpush1.bf16.msra.mxu1 %v1385_v26  ;;  %1352 = vmatprep.subr.bf16.mxu0 %v1351_v27  ;;  %v1355_v40 = vpack.c.bf16 %v66_v37, %v62_v36  ;;  %v1391_v44 = vpack.c.bf16 %v68_v41, %v64_v38  ;;  %v63_v45 = vld [vmem:[%s2194_s0 + $0xd0] sm:$0xff]  ;;  %v70_v47 = vld [vmem:[%s2194_s0 + $0x108] sm:$0xff]  ;;  %v72_v49 = vld [vmem:[%s2194_s0 + $0x118] sm:$0xff]  ;;  %v1357_v51 = vpack.c.bf16 %v65_v43, %v61_v42 }
   0xc   :  { %1388 = vmatprep.subr.bf16.mxu1 %v1387_v31  ;;  %v67_v46 = vld [vmem:[%s2194_s0 + $0xf0] sm:$0xff]  ;;  %v74_v48 = vld [vmem:[%s2194_s0 + $0x128] sm:$0xff]  ;;  %v76_v50 = vld [vmem:[%s2194_s0 + $0x138] sm:$0xff] }
   0xd   :  { %v1393_v52 = vpack.c.bf16 %v67_v46, %v63_v45  ;;  %v1359_v53 = vpack.c.bf16 %v74_v48, %v70_v47  ;;  %v69_v54 = vld [vmem:[%s2194_s0 + $0x100] sm:$0xff]  ;;  %v71_v56 = vld [vmem:[%s2194_s0 + $0x110] sm:$0xff]  ;;  %v1395_v57 = vpack.c.bf16 %v76_v50, %v72_v49  ;;  %v78_v59 = vld [vmem:[%s2194_s0 + $0x148] sm:$0xff] }
   0xe   :  { %1354 = vmatpush1.bf16.msra.mxu0 %v1353_v35  ;;  %v73_v55 = vld [vmem:[%s2194_s0 + $0x120] sm:$0xff]  ;;  %v75_v58 = vld [vmem:[%s2194_s0 + $0x130] sm:$0xff]  ;;  %v82_v60 = vld [vmem:[%s2194_s0 + $0x168] sm:$0xff] }
   0xf   :  { %1390 = vmatpush1.bf16.msra.mxu1 %v1389_v39  ;;  %1356 = vmatprep.subr.bf16.mxu0 %v1355_v40  ;;  %v80_v61 = vld [vmem:[%s2194_s0 + $0x158] sm:$0xff]  ;;  %v1361_v63 = vpack.c.bf16 %v73_v55, %v69_v54  ;;  %v1397_v0 = vpack.c.bf16 %v75_v58, %v71_v56  ;;  %v1363_v1 = vpack.c.bf16 %v82_v60, %v78_v59  ;;  %v77_v2 = vld [vmem:[%s2194_s0 + $0x140] sm:$0xff]  ;;  %v79_v4 = vld [vmem:[%s2194_s0 + $0x150] sm:$0xff] }
  0x10   :  { %1392 = vmatprep.subr.bf16.mxu1 %v1391_v44  ;;  %v84_v62 = vld [vmem:[%s2194_s0 + $0x178] sm:$0xff]  ;;  %v81_v3 = vld [vmem:[%s2194_s0 + $0x160] sm:$0xff]  ;;  %v83_v6 = vld [vmem:[%s2194_s0 + $0x170] sm:$0xff] }
  0x11   :  { %v1399_v5 = vpack.c.bf16 %v84_v62, %v80_v61  ;;  %v86_v7 = vld [vmem:[%s2194_s0 + $0x188] sm:$0xff]  ;;  %v88_v9 = vld [vmem:[%s2194_s0 + $0x198] sm:$0xff]  ;;  %v1365_v11 = vpack.c.bf16 %v81_v3, %v77_v2  ;;  %v1401_v12 = vpack.c.bf16 %v83_v6, %v79_v4  ;;  %v85_v14 = vld [vmem:[%s2194_s0 + $0x180] sm:$0xff] }
  0x12   :  { %1358 = vmatpush1.bf16.msra.mxu0 %v1357_v51  ;;  %v90_v8 = vld [vmem:[%s2194_s0 + $0x1a8] sm:$0xff]  ;;  %v92_v10 = vld [vmem:[%s2194_s0 + $0x1b8] sm:$0xff]  ;;  %v89_v15 = vld [vmem:[%s2194_s0 + $0x1a0] sm:$0xff] }
  0x13   :  { %1394 = vmatpush1.bf16.msra.mxu1 %v1393_v52  ;;  %1360 = vmatprep.subr.bf16.mxu0 %v1359_v53  ;;  %v1367_v13 = vpack.c.bf16 %v90_v8, %v86_v7  ;;  %v87_v16 = vld [vmem:[%s2194_s0 + $0x190] sm:$0xff]  ;;  %v1403_v17 = vpack.c.bf16 %v92_v10, %v88_v9  ;;  %v94_v19 = vld [vmem:[%s2194_s0 + $0x1c8] sm:$0xff]  ;;  %v96_v21 = vld [vmem:[%s2194_s0 + $0x1d8] sm:$0xff]  ;;  %v1369_v23 = vpack.c.bf16 %v89_v15, %v85_v14 }
  0x14   :  { %1396 = vmatprep.subr.bf16.mxu1 %v1395_v57  ;;  %v91_v18 = vld [vmem:[%s2194_s0 + $0x1b0] sm:$0xff]  ;;  %v98_v20 = vld [vmem:[%s2194_s0 + $0x1e8] sm:$0xff]  ;;  %v100_v22 = vld [vmem:[%s2194_s0 + $0x1f8] sm:$0xff] }
  0x15   :  { %v93_v24 = vld [vmem:[%s2194_s0 + $0x1c0] sm:$0xff]  ;;  %v1405_v26 = vpack.c.bf16 %v91_v18, %v87_v16  ;;  %v1371_v27 = vpack.c.bf16 %v98_v20, %v94_v19  ;;  %v95_v28 = vld [vmem:[%s2194_s0 + $0x1d0] sm:$0xff]  ;;  %v34_v30 = vld [vmem:[%s2195_s1 + $0x8] sm:$0xff]  ;;  %v1407_v31 = vpack.c.bf16 %v100_v22, %v96_v21 }
  0x16   :  { %1362 = vmatpush1.bf16.msra.mxu0 %v1361_v63  ;;  %v97_v25 = vld [vmem:[%s2194_s0 + $0x1e0] sm:$0xff]  ;;  %v99_v29 = vld [vmem:[%s2194_s0 + $0x1f0] sm:$0xff]  ;;  %v102_v32 = vld [vmem:[%s2194_s0 + $0x208] sm:$0xff]  ;;  %1179 = vmatprep.mubr.msk.f32.mxu0 %vm113_vm0, %v34_v30 }
  0x17   :  { %1398 = vmatpush1.bf16.msra.mxu1 %v1397_v0  ;;  %1364 = vmatprep.subr.bf16.mxu0 %v1363_v1  ;;  %v106_v33 = vld [vmem:[%s2194_s0 + $0x228] sm:$0xff]  ;;  %v293_v34 = vld [vmem:[%s2196_s2] sm:$0xff]  ;;  %v104_v35 = vld [vmem:[%s2194_s0 + $0x218] sm:$0xff] }
  0x18   :  { %1400 = vmatprep.subr.bf16.mxu1 %v1399_v5  ;;  %v108_v36 = vld [vmem:[%s2194_s0 + $0x238] sm:$0xff]  ;;  %1183 = vmatprep.mubr.msk.f32.mxu1 %vm113_vm0, %v34_v30 }
  0x19   :  { %297 = vperm.xlu0 %1532, %v293_v34  }
  0x1a   :  { %1366 = vmatpush1.bf16.msra.mxu0 %v1365_v11 }
  0x1b   :  { %1402 = vmatpush1.bf16.msra.mxu1 %v1401_v12  ;;  %1368 = vmatprep.subr.bf16.mxu0 %v1367_v13 }
  0x1c   :  { %1404 = vmatprep.subr.bf16.mxu1 %v1403_v17 }
  0x1d   :  { %14 = vsyncpa [#allocation5], 0  ;;  %v1373_v37 = vpack.c.bf16 %v97_v25, %v93_v24  ;;  %v294_v38 = vld [vmem:[%s2196_s2 + $0x8] sm:$0xff]  ;;  %v1409_v39 = vpack.c.bf16 %v99_v29, %v95_v28  ;;  %v1375_v40 = vpack.c.bf16 %v106_v33, %v102_v32  ;;  %v101_v41 = vld [vmem:[%s2194_s0 + $0x200] sm:$0xff]  ;;  %v1411_v43 = vpack.c.bf16 %v108_v36, %v104_v35  ;;  %s1561_s25 = smov 25   ;;  %s1562_s26 = smov 125  }
  0x1e   :  { %1370 = vmatpush1.bf16.msra.mxu0 %v1369_v23  ;;  %v105_v42 = vld [vmem:[%s2194_s0 + $0x220] sm:$0xff]  ;;  %v103_v44 = vld [vmem:[%s2194_s0 + $0x210] sm:$0xff]  ;;  %302 = vperm.xlu0 %1532, %v294_v38   ;;  %v110_v48 = vld [vmem:[%s2194_s0 + $0x248] sm:$0x3f]  ;;  %vm120_vm1 = vcmask 1045504   ;;  %vm312_vm2 = vcmask 196608  }
  0x1f   :  { %1406 = vmatpush1.bf16.msra.mxu1 %v1405_v26  ;;  %1372 = vmatprep.subr.bf16.mxu0 %v1371_v27  ;;  %v107_v45 = vld [vmem:[%s2194_s0 + $0x230] sm:$0xff]  ;;  %v1377_v46 = vpack.c.bf16 %v105_v42, %v101_v41  ;;  %v112_v49 = vld [vmem:[%s2194_s0 + $0x258] sm:$0x3f]  ;;  %v109_v50 = vld [vmem:[%s2194_s0 + $0x240] sm:$0x3f]  ;;  %s1563_s27 = smov 75  }
  0x20   :  { %1408 = vmatprep.subr.bf16.mxu1 %v1407_v31  ;;  %v1413_v47 = vpack.c.bf16 %v107_v45, %v103_v44  ;;  %v111_v51 = vld [vmem:[%s2194_s0 + $0x250] sm:$0x3f]  ;;  %v33_v52 = vld [vmem:[%s2195_s1] sm:$0xff]  ;;  %v36_v53 = vld [vmem:[%s2195_s1 + $0x18] sm:$0xff]  ;;  %s1559_s0 = smov 103   ;;  %s1564_s28 = smov 100  }
  0x21   :  { %v35_v54 = vld [vmem:[%s2195_s1 + $0x10] sm:$0xff]  ;;  %s1560_s1 = smov 50   ;;  %s1565_s29 = smov 22   ;;  %v778_v22 = vld [vmem:[%s2197_s3 + $0x100] sm:$0xff]  ;;  %v779_v23 = vld [vmem:[%s2197_s3 + $0x108] sm:$0xff]  ;;  %v1569_v25 = vmov 0.0|0.0  }
  0x22   :  { %1374 = vmatpush1.bf16.msra.mxu0 %v1373_v37  ;;  %s1566_s30 = smov 47   ;;  %s1567_s10 = smov 122   ;;  %v762_v24 = vld [vmem:[%s2197_s3 + $0x80] sm:$0xff]  ;;  %v1448_v26 = vpack.c.bf16 %v779_v23, %v778_v22  ;;  %v763_v27 = vld [vmem:[%s2197_s3 + $0x88] sm:$0xff]  ;;  %v780_v33 = vld [vmem:[%s2197_s3 + $0x110] sm:$0xff]  ;;  %vm326_vm3 = vcmask 401608  }
  0x23   :  { %1410 = vmatpush1.bf16.msra.mxu1 %v1409_v39  ;;  %1376 = vmatprep.subr.bf16.mxu0 %v1375_v40  ;;  %s1568_s16 = smov 72   ;;  %v746_v28 = vld [vmem:[%s2197_s3] sm:$0xff]  ;;  %v747_v29 = vld [vmem:[%s2197_s3 + $0x8] sm:$0xff]  ;;  %v1415_v30 = vpack.c.bf16 %v763_v27, %v762_v24  ;;  %s1570_s23 = smov 97   ;;  %v781_v34 = vld [vmem:[%s2197_s3 + $0x118] sm:$0xff]  ;;  %vm340_vm4 = vcmask 606608  }
  0x24   :  { %1412 = vmatprep.subr.bf16.mxu1 %v1411_v43  ;;  %v1417_v31 = vpack.c.bf16 %v747_v29, %v746_v28  ;;  %v764_v35 = vld [vmem:[%s2197_s3 + $0x90] sm:$0xff]  ;;  %v1451_v36 = vpack.c.bf16 %v781_v34, %v780_v33  ;;  %v765_v37 = vld [vmem:[%s2197_s3 + $0x98] sm:$0xff]  ;;  %s1571_s14 = smov 19   ;;  %v782_v43 = vld [vmem:[%s2197_s3 + $0x120] sm:$0xff]  ;;  %s1574_s13 = smov 69   ;;  %vm354_vm5 = vcmask 811608  }
  0x25   :  { %v748_v38 = vld [vmem:[%s2197_s3 + $0x10] sm:$0xff]  ;;  %v749_v39 = vld [vmem:[%s2197_s3 + $0x18] sm:$0xff]  ;;  %v1419_v40 = vpack.c.bf16 %v765_v37, %v764_v35  ;;  %v783_v44 = vld [vmem:[%s2197_s3 + $0x128] sm:$0xff]  ;;  %vm385_vm6 = vcmask 1041384   ;;  %vm386_vm7 = vcmask 174082   ;;  %vm382_vm8 = vcmask 1022976  }
  0x26   :  { %1378 = vmatpush1.bf16.msra.mxu0 %v1377_v46  ;;  %v1421_v41 = vpack.c.bf16 %v749_v39, %v748_v38  ;;  %v766_v45 = vld [vmem:[%s2197_s3 + $0xa0] sm:$0xff]  ;;  %v1454_v46 = vpack.c.bf16 %v783_v44, %v782_v43  ;;  %v759_v23 = vld [vmem:[%s2197_s3 + $0x68] sm:$0xff]  ;;  %v776_v28 = vld [vmem:[%s2197_s3 + $0xf0] sm:$0xff]  ;;  %vm368_vm9 = vcmask 1016608   ;;  %vm401_vm11 = vcmask 377008  }
  0x27   :  { %1414 = vmatpush1.bf16.msra.mxu1 %v1413_v47  ;;  %1177 = vmatprep.subr.msk.mxu0 %vm120_vm1, %v110_v48  ;;  %v767_v47 = vld [vmem:[%s2197_s3 + $0xa8] sm:$0xff]  ;;  %v750_v48 = vld [vmem:[%s2197_s3 + $0x20] sm:$0xff]  ;;  %v792_v29 = vld [vmem:[%s2197_s3 + $0x170] sm:$0xff]  ;;  %vm605_vm12 = vcmask 818176   ;;  %vm415_vm13 = vcmask 582008   ;;  %vm429_vm14 = vcmask 787008  }
  0x28   :  { %1181 = vmatprep.subr.msk.mxu1 %vm120_vm1, %v112_v49  ;;  %v751_v49 = vld [vmem:[%s2197_s3 + $0x28] sm:$0xff]  ;;  %v758_v22 = vld [vmem:[%s2197_s3 + $0x60] sm:$0xff]  ;;  %v760_v34 = vld [vmem:[%s2197_s3 + $0x70] sm:$0xff]  ;;  %vm460_vm15 = vcmask 1041360  }
  0x29   :  { %v761_v35 = vld [vmem:[%s2197_s3 + $0x78] sm:$0xff]  ;;  %v794_v38 = vld [vmem:[%s2197_s3 + $0x180] sm:$0xff]  ;;  %v795_v39 = vld [vmem:[%s2197_s3 + $0x188] sm:$0xff] }
  0x2a   :  { %1178 = vmatpush1.msk.msra.mxu0 %vm120_vm1, %v109_v50  ;;  %v1423_v50 = vpack.c.bf16 %v767_v47, %v766_v45  ;;  %v1445_v37 = vpack.c.bf16 %v761_v35, %v760_v34  ;;  %vm2056_vm10 = vmor %vm386_vm7, %vm385_vm6  ;;  %vm490_vm6 = vcmask 557408   ;;  %vm504_vm7 = vcmask 762408  }
  0x2b   :  { %1182 = vmatpush1.msk.msra.mxu1 %vm120_vm1, %v111_v51  ;;  %198 = vmatmul.mubr.f32.vlgmr.msra.gmra.mrb[0].mxu0 %v33_v52  ;;  %v1425_v51 = vpack.c.bf16 %v751_v49, %v750_v48  ;;  %vm457_vm1 = vcmask 998400  }
  0x2c   :  { %275 = vmatmul.mubr.f32.vlgmr.msra.gmra.mrb[0].mxu1 %v33_v52  ;;  %1180 = vmatprep.mubr.msk.f32.mxu0 %vm113_vm0, %v36_v53 }
  0x2d   :  { %1184 = vmatprep.mubr.msk.f32.mxu1 %vm113_vm0, %v36_v53  ;;  %1447 = vmatprep.subr.bf16.mxu1 %v1569_v25  ;;  %v784_v53 = vld [vmem:[%s2197_s3 + $0x130] sm:$0xff]  ;;  %vm461_vm0 = vcmask 149506  }
  0x2e   :  { %1449 = vmatpush1.bf16.msra.mxu1 %v1448_v26  ;;  %1416 = vmatprep.subr.bf16.mxu0 %v1415_v30  ;;  %v793_v30 = vld [vmem:[%s2197_s3 + $0x178] sm:$0xff] }
  0x2f   :  { %204 = vmatmul.mubr.f32.gmra.mrb[2].mxu0 %v35_v54  ;;  %1450 = vmatprep.subr.bf16.mxu1 %v1569_v25 }
  0x30   :  { %281 = vmatmul.mubr.f32.gmra.mrb[2].mxu1 %v35_v54  ;;  %1418 = vmatpush3.bf16.msra.mxu0 %v1417_v31  ;;  %v785_v54 = vld [vmem:[%s2197_s3 + $0x138] sm:$0xff] }
  0x31   :  { %1420 = vmatprep.subr.bf16.mxu0 %v1419_v40  ;;  %v777_v31 = vld [vmem:[%s2197_s3 + $0xf8] sm:$0xff]  ;;  %v1472_v40 = vpack.c.bf16 %v795_v39, %v794_v38 }
  0x32   :  { %1452 = vmatpush1.bf16.msra.mxu1 %v1451_v36  ;;  %v1443_v33 = vpack.c.bf16 %v777_v31, %v776_v28  ;;  %v1469_v36 = vpack.c.bf16 %v793_v30, %v792_v29  ;;  %v968_v30 = vld [vmem:[%s2199_s5] sm:$0xff]  ;;  %v969_v31 = vld [vmem:[%s2199_s5 + $0x8] sm:$0xff]  ;;  %v971_v38 = vld [vmem:[%s2199_s5 + $0x18] sm:$0xff] }
  0x33   :  { %1453 = vmatprep.subr.bf16.mxu1 %v1569_v25 }
  0x34   :  { %1422 = vmatpush3.bf16.msra.mxu0 %v1421_v41 }
  0x35   :  { %1424 = vmatprep.subr.bf16.mxu0 %v1423_v50  ;;  %v978_v50 = vld [vmem:[%s2199_s5 + $0x50] sm:$0xff] }
  0x36   :  { %1455 = vmatpush1.bf16.msra.mxu1 %v1454_v46 }
  0x37   :  { %1456 = vmatprep.subr.bf16.mxu1 %v1569_v25 }
  0x38   :  { %1426 = vmatpush3.bf16.msra.mxu0 %v1425_v51 }
  0x98   :  { %v298_v61 = vpop.permute.xlu0 %297 }
  0x9d   :  { %v303_v8 = vpop.permute.xlu0 %302 }
  0xfe   :  { %v199_v55 = vpop.f32.mrb[0].mxu0 }
  0xff   :  { %v276_v56 = vpop.f32.mrb[0].mxu1  ;;  %v201_v57 = vpop.f32.mrb[1].mxu0 }
 0x100   :  { %v287_v58 = vmax.f32 %v199_v55, %v201_v57  ;;  %v278_v59 = vpop.f32.mrb[1].mxu1  ;;  %v768_v55 = vld [vmem:[%s2197_s3 + $0xb0] sm:$0xff]  ;;  %v769_v57 = vld [vmem:[%s2197_s3 + $0xb8] sm:$0xff] }
 0x101   :  { %v289_v60 = vmax.f32 %v276_v56, %v278_v59  ;;  %v1457_v56 = vpack.c.bf16 %v785_v54, %v784_v53  ;;  %v1427_v59 = vpack.c.bf16 %v769_v57, %v768_v55 }
 0x102   :  { %v205_v62 = vpop.f32.mrb[2].mxu0 }
 0x103   :  { %v291_v63 = vmax.f32 %v287_v58, %v289_v60  ;;  %v282_v0 = vpop.f32.mrb[2].mxu1  ;;  %v207_v1 = vpop.f32.mrb[3].mxu0  ;;  %v752_v58 = vld [vmem:[%s2197_s3 + $0x30] sm:$0xff]  ;;  %v753_v60 = vld [vmem:[%s2197_s3 + $0x38] sm:$0xff]  ;;  %1458 = vmatpush1.bf16.msra.mxu1 %v1457_v56  ;;  %1428 = vmatprep.subr.bf16.mxu0 %v1427_v59 }
 0x104   :  { %v288_v2 = vmax.f32 %v205_v62, %v207_v1  ;;  %v284_v3 = vpop.f32.mrb[3].mxu1  ;;  %v787_v62 = vld [vmem:[%s2197_s3 + $0x148] sm:$0xff]  ;;  %v770_v1 = vld [vmem:[%s2197_s3 + $0xc0] sm:$0xff]  ;;  %1459 = vmatprep.subr.bf16.mxu1 %v1569_v25 }
 0x105   :  { %v305_v4 = vadd.f32 %v298_v61, %v291_v63  ;;  %v290_v5 = vmax.f32 %v282_v0, %v284_v3  ;;  %v786_v61 = vld [vmem:[%s2197_s3 + $0x140] sm:$0xff]  ;;  %v1429_v63 = vpack.c.bf16 %v753_v60, %v752_v58 }
 0x106   :  { %v1460_v0 = vpack.c.bf16 %v787_v62, %v786_v61  ;;  %v754_v3 = vld [vmem:[%s2197_s3 + $0x40] sm:$0xff] }
 0x107   :  { %v307_v6 = vmax.f32 %v305_v4, 0.0  ;;  %v292_v7 = vmax.f32 %v288_v2, %v290_v5  ;;  %v771_v2 = vld [vmem:[%s2197_s3 + $0xc8] sm:$0xff]  ;;  %1430 = vmatpush3.bf16.msra.mxu0 %v1429_v63 }
 0x108   :  { %v1431_v4 = vpack.c.bf16 %v771_v2, %v770_v1  ;;  %v755_v5 = vld [vmem:[%s2197_s3 + $0x48] sm:$0xff]  ;;  %1461 = vmatpush1.bf16.msra.mxu1 %v1460_v0 }
 0x109   :  { %309 = vst [vmem:[#allocation2] sm:$0xff] %v307_v6  ;;  %v306_v9 = vadd.f32 %v303_v8, %v292_v7  ;;  %v1433_v7 = vpack.c.bf16 %v755_v5, %v754_v3  ;;  %1462 = vmatprep.subr.bf16.mxu1 %v1569_v25  ;;  %v1070_v1 = vld [vmem:[%s2201_s7 + $0x28] sm:$0xff] }
 0x10a   :  { %1432 = vmatprep.subr.bf16.mxu0 %v1431_v4 }
 0x10b   :  { %v308_v10 = vmax.f32 %v306_v9, 0.0  ;;  %v788_v9 = vld [vmem:[%s2197_s3 + $0x150] sm:$0xff]  ;;  %1434 = vmatpush3.bf16.msra.mxu0 %v1433_v7 }
 0x10d   :  { %310 = vst [vmem:[#allocation2 + $0x8] sm:$0xff] %v308_v10  ;;  %v789_v10 = vld [vmem:[%s2197_s3 + $0x158] sm:$0xff] }
 0x110   :  { %v1200_v11 = vld.sshfl [vmem:[#allocation2] sm:$0x1 pattern:$0x76325410] }
 0x111   :  { %548 = vrot.lane.b32.xlu1 %v1200_v11, %s1559_s0  ;;  %v1186_v12 = vld.sshfl [vmem:[#allocation2 + $0x2] sm:$0x1 pattern:$0x76325410]  ;;  %v311_v13 = vld [vmem:[#allocation2] sm:$0x1] }
 0x112   :  { %337 = vrot.lane.b32.xlu0 %v1186_v12, %s1560_s1  ;;  %313 = vst.msk [vmem:[#allocation3] sm:$0x1] %vm312_vm2, %v311_v13  ;;  %v1185_v14 = vld.sshfl [vmem:[#allocation2 + $0x1] sm:$0x1 pattern:$0x76325410] }
 0x113   :  { %v1189_v15 = vld.sshfl [vmem:[#allocation2 + $0x5] sm:$0x1 pattern:$0x76325410]  ;;  %v772_v11 = vld [vmem:[%s2197_s3 + $0xd0] sm:$0xff]  ;;  %v773_v13 = vld [vmem:[%s2197_s3 + $0xd8] sm:$0xff] }
 0x114   :  { %v1187_v16 = vld.sshfl [vmem:[#allocation2 + $0x3] sm:$0x1 pattern:$0x76325410] }
 0x115   :  { %323 = vrot.lane.b32.xlu1 %v1185_v14, %s1561_s25  ;;  %v1188_v17 = vld.sshfl [vmem:[#allocation2 + $0x4] sm:$0x1 pattern:$0x76325410]  ;;  %v756_v14 = vld [vmem:[%s2197_s3 + $0x50] sm:$0xff] }
 0x116   :  { %563 = vrot.lane.b32.xlu0 %v1186_v12, %s1561_s25  ;;  %v1190_v18 = vld.sshfl [vmem:[#allocation2 + $0x6] sm:$0x1 pattern:$0x76325410]  ;;  %s1572_s25 = smov 44   ;;  %v1463_v12 = vpack.c.bf16 %v789_v10, %v788_v9 }
 0x117   :  { %v1191_v19 = vld.sshfl [vmem:[#allocation2 + $0x7] sm:$0x1 pattern:$0x76325410] }
 0x118   :  { %v1194_v20 = vld.sshfl [vmem:[#allocation2 + $0xa] sm:$0x1 pattern:$0x76325410]  ;;  %1464 = vmatpush1.bf16.msra.mxu1 %v1463_v12 }
 0x119   :  { %379 = vrot.lane.b32.xlu1 %v1189_v15, %s1562_s26  ;;  %v1192_v21 = vld.sshfl [vmem:[#allocation2 + $0x8] sm:$0x1 pattern:$0x76325410]  ;;  %1465 = vmatprep.subr.bf16.mxu1 %v1569_v25 }
 0x11a   :  { %351 = vrot.lane.b32.xlu0 %v1187_v16, %s1563_s27  ;;  %v1193_v32 = vld.sshfl [vmem:[#allocation2 + $0x9] sm:$0x1 pattern:$0x76325410] }
 0x11b   :  { %v1195_v42 = vld.sshfl [vmem:[#allocation2 + $0xb] sm:$0x1 pattern:$0x76325410] }
 0x11c   :  { %v1196_v52 = vld.sshfl [vmem:[#allocation2 + $0xc] sm:$0x1 pattern:$0x76325410] }
 0x11d   :  { %602 = vrot.lane.b32.xlu1 %v1189_v15, %s1564_s28  ;;  %v1199_v6 = vld.sshfl [vmem:[#allocation2 + $0xf] sm:$0x1 pattern:$0x76325410]  ;;  %v757_v15 = vld [vmem:[%s2197_s3 + $0x58] sm:$0xff] }
 0x11e   :  { %365 = vrot.lane.b32.xlu0 %v1188_v17, %s1564_s28  ;;  %v1197_v8 = vld.sshfl [vmem:[#allocation2 + $0xd] sm:$0x1 pattern:$0x76325410]  ;;  %s1573_s28 = smov 119  }
 0x11f   :  { %v1198_v24 = vld.sshfl [vmem:[#allocation2 + $0xe] sm:$0x1 pattern:$0x76325410] }
 0x121   :  { %576 = vrot.lane.b32.xlu1 %v1187_v16, %s1560_s1  ;;  %v1435_v16 = vpack.c.bf16 %v773_v13, %v772_v11 }
 0x122   :  { %398 = vrot.lane.b32.xlu0 %v1190_v18, %s1565_s29 }
 0x123   :  { %1436 = vmatprep.subr.bf16.mxu0 %v1435_v16 }
 0x125   :  { %589 = vrot.lane.b32.xlu1 %v1188_v17, %s1563_s27  ;;  %v1437_v17 = vpack.c.bf16 %v757_v15, %v756_v14 }
 0x126   :  { %412 = vrot.lane.b32.xlu0 %v1191_v19, %s1566_s30 }
 0x127   :  { %1438 = vmatpush3.bf16.msra.mxu0 %v1437_v17 }
 0x129   :  { %618 = vrot.lane.b32.xlu1 %v1190_v18, %s1562_s26  ;;  %v790_v18 = vld [vmem:[%s2197_s3 + $0x160] sm:$0xff] }
 0x12a   :  { %631 = vrot.lane.b32.xlu0 %v1191_v19, %s1565_s29  ;;  %v791_v19 = vld [vmem:[%s2197_s3 + $0x168] sm:$0xff]  ;;  %s1579_s29 = smov [#allocation4]  }
 0x12b   :  { %v1466_v26 = vpack.c.bf16 %v791_v19, %v790_v18  ;;  %s1169_s2 = sshll.u32 %s1579_s29, 4  ;;  %s1170_s2 = int_to_ptr.vmem [resolvable:$true] %s1169_s2 }
 0x12c   :  { %p1539_p1 = scmp.lt.s32.totalorder %s1170_s2, %s1170_s2 }
 0x12d   :  { %454 = vrot.lane.b32.xlu1 %v1194_v20, %s1567_s10  ;;  %1467 = vmatpush1.bf16.msra.mxu1 %v1466_v26 }
 0x12e   :  { %426 = vrot.lane.b32.xlu0 %v1192_v21, %s1568_s16  ;;  %1468 = vmatprep.subr.bf16.mxu1 %v1569_v25 }
 0x131   :  { %670 = vrot.lane.b32.xlu1 %v1194_v20, %s1570_s23  ;;  %v774_v20 = vld [vmem:[%s2197_s3 + $0xe0] sm:$0xff]  ;;  %1470 = vmatpush1.bf16.msra.mxu1 %v1469_v36  ;;  %v1475_v36 = vpack.c.bf16 %v969_v31, %v968_v30 }
 0x132   :  { %440 = vrot.lane.b32.xlu0 %v1193_v32, %s1570_s23  ;;  %1471 = vmatprep.subr.bf16.mxu1 %v1569_v25 }
 0x135   :  { %644 = vrot.lane.b32.xlu1 %v1192_v21, %s1566_s30  ;;  %v775_v21 = vld [vmem:[%s2197_s3 + $0xe8] sm:$0xff]  ;;  %1473 = vmatpush1.bf16.msra.mxu1 %v1472_v40 }
 0x136   :  { %473 = vrot.lane.b32.xlu0 %v1195_v42, %s1571_s14  ;;  %v1439_v27 = vpack.c.bf16 %v775_v21, %v774_v20  ;;  %1495 = vmatprep.subr.bf16.mxu1 %v1569_v25  ;;  %v1576_v20 = vmov 1983009808  }
 0x137   :  { %v806_v21 = vunpack.c.l.s4 %v1576_v20 }
 0x138   :  { %1440 = vmatprep.subr.bf16.mxu0 %v1439_v27 }
 0x139   :  { %657 = vrot.lane.b32.xlu1 %v1193_v32, %s1568_s16  ;;  %v1441_v32 = vpack.c.bf16 %v759_v23, %v758_v22  ;;  %v808_v22 = vlaneseq  ;;  %v807_v26 = vunpack.c.0.s8 %v806_v21 }
 0x13a   :  { %487 = vrot.lane.b32.xlu0 %v1196_v52, %s1572_s25 }
 0x13b   :  { %1442 = vmatpush3.bf16.msra.mxu0 %v1441_v32  ;;  %v809_v27 = vshrl.u32 %v808_v22, 7 }
 0x13c   :  { %1444 = vmatprep.subr.bf16.mxu0 %v1443_v33 }
 0x13d   :  { %686 = vrot.lane.b32.xlu1 %v1195_v42, %s1567_s10  ;;  %v552_v42 = vld [vmem:[#allocation2 + $0x1] sm:$0x1]  ;;  %v810_v28 = vsub.s32 %v807_v26, %v809_v27 }
 0x13e   :  { %699 = vrot.lane.b32.xlu0 %v1196_v52, %s1571_s14  ;;  %s1575_s14 = smov 94  }
 0x13f   :  { %1446 = vmatpush3.bf16.msra.mxu0 %v1445_v37  ;;  %v970_v37 = vld [vmem:[%s2199_s5 + $0x10] sm:$0xff] }
 0x140   :  { %1474 = vmatprep.subr.bf16.mxu0 %v1569_v25  ;;  %v1478_v40 = vpack.c.bf16 %v971_v38, %v970_v37 }
 0x141   :  { %529 = vrot.lane.b32.xlu1 %v1199_v6, %s1573_s28 }
 0x142   :  { %501 = vrot.lane.b32.xlu0 %v1197_v8, %s1574_s13 }
 0x145   :  { %738 = vrot.lane.b32.xlu1 %v1199_v6, %s1575_s14 }
 0x146   :  { %515 = vrot.lane.b32.xlu0 %v1198_v24, %s1575_s14 }
 0x149   :  { %712 = vrot.lane.b32.xlu1 %v1197_v8, %s1572_s25 }
 0x14d   :  { %725 = vrot.lane.b32.xlu1 %v1198_v24, %s1574_s13 }
 0x183   :  { %v549_v41 = vpop.permute.xlu1 %548 }
 0x184   :  { %551 = vst.msk [vmem:[#allocation3 + $0x1] sm:$0x1] %vm312_vm2, %v549_v41  ;;  %v338_v43 = vpop.permute.xlu0 %337  ;;  %vm443_vm2 = vcmask 992008   ;;  %v972_v41 = vld [vmem:[%s2199_s5 + $0x20] sm:$0xff] }
 0x185   :  { %553 = vst.msk [vmem:[#allocation3 + $0x1] sm:$0x1] %vm326_vm3, %v552_v42  ;;  %v973_v42 = vld [vmem:[%s2199_s5 + $0x28] sm:$0xff] }
 0x187   :  { %v324_v44 = vpop.permute.xlu1 %323 }
 0x188   :  { %v564_v45 = vpop.permute.xlu0 %563  ;;  %327 = vst.msk [vmem:[#allocation3] sm:$0x1] %vm326_vm3, %v324_v44  ;;  %vm2070_vm3 = vmor %vm461_vm0, %vm460_vm15  ;;  %v974_v44 = vld [vmem:[%s2199_s5 + $0x30] sm:$0xff]  ;;  %vm1577_vm15 = vmmov 0   ;;  %vm990_vm0 = vcmask 982016  }
 0x189   :  { %566 = vst.msk [vmem:[#allocation3 + $0x1] sm:$0x1] %vm340_vm4, %v564_v45  ;;  %341 = vst.msk [vmem:[#allocation3] sm:$0x1] %vm340_vm4, %v338_v43  ;;  %vm476_vm4 = vcmask 352408   ;;  %v1481_v43 = vpack.c.bf16 %v973_v42, %v972_v41  ;;  %v975_v45 = vld [vmem:[%s2199_s5 + $0x38] sm:$0xff] }
 0x18b   :  { %v380_v46 = vpop.permute.xlu1 %379 }
 0x18c   :  { %v352_v47 = vpop.permute.xlu0 %351  ;;  %v381_v48 = vrot.slane %v380_v46, 6 }
 0x18d   :  { %355 = vst.msk [vmem:[#allocation3] sm:$0x1] %vm354_vm5, %v352_v47  ;;  %v976_v47 = vld [vmem:[%s2199_s5 + $0x40] sm:$0xff] }
 0x18e   :  { %v383_v52 = vsel %vm382_vm8, %v381_v48, %v380_v46  ;;  %vm535_vm8 = vcmask 1041336   ;;  %v1484_v46 = vpack.c.bf16 %v975_v45, %v974_v44  ;;  %v977_v48 = vld [vmem:[%s2199_s5 + $0x48] sm:$0xff] }
 0x18f   :  { %v603_v49 = vpop.permute.xlu1 %602 }
 0x190   :  { %v366_v51 = vpop.permute.xlu0 %365  ;;  %v604_v54 = vrot.slane %v603_v49, 6 }
 0x191   :  { %369 = vst.msk [vmem:[#allocation3] sm:$0x1] %vm368_vm9, %v366_v51  ;;  %v979_v51 = vld [vmem:[%s2199_s5 + $0x58] sm:$0xff] }
 0x192   :  { %388 = vst.msk [vmem:[#allocation3] sm:$0x5] %vm2056_vm10, %v383_v52  ;;  %v606_v57 = vsel %vm605_vm12, %v604_v54, %v603_v49  ;;  %v1487_v49 = vpack.c.bf16 %v977_v48, %v976_v47  ;;  %v1490_v52 = vpack.c.bf16 %v979_v51, %v978_v50  ;;  %v981_v54 = vld [vmem:[%s2199_s5 + $0x68] sm:$0xff] }
 0x193   :  { %v577_v53 = vpop.permute.xlu1 %576 }
 0x194   :  { %v399_v55 = vpop.permute.xlu0 %398  ;;  %579 = vst.msk [vmem:[#allocation3 + $0x1] sm:$0x1] %vm354_vm5, %v577_v53  ;;  %vm673_vm5 = vcmask 793600   ;;  %v980_v53 = vld [vmem:[%s2199_s5 + $0x60] sm:$0xff] }
 0x195   :  { %402 = vst.msk [vmem:[#allocation3 + $0x2] sm:$0x1] %vm401_vm11, %v399_v55  ;;  %v1493_v55 = vpack.c.bf16 %v981_v54, %v980_v53 }
 0x197   :  { %v590_v56 = vpop.permute.xlu1 %589 }
 0x198   :  { %v413_v58 = vpop.permute.xlu0 %412  ;;  %592 = vst.msk [vmem:[#allocation3 + $0x1] sm:$0x1] %vm368_vm9, %v590_v56  ;;  %vm536_vm9 = vcmask 124930   ;;  %v1578_v56 = vmov 0.0  }
 0x199   :  { %416 = vst.msk [vmem:[#allocation3 + $0x2] sm:$0x1] %vm415_vm13, %v413_v58  ;;  %vm537_vm12 = vmor %vm536_vm9, %vm535_vm8  ;;  %v1066_v58 = vld [vmem:[%s2201_s7 + $0x8] sm:$0xff] }
 0x19a   :  { %608 = vst.msk [vmem:[#allocation3 + $0x1] sm:$0x5] %vm2056_vm10, %v606_v57  ;;  %vm532_vm10 = vcmask 973824   ;;  %v1065_v57 = vld [vmem:[%s2201_s7] sm:$0xff] }
 0x19b   :  { %v619_v59 = vpop.permute.xlu1 %618 }
 0x19c   :  { %v632_v60 = vpop.permute.xlu0 %631  ;;  %621 = vst.msk [vmem:[#allocation3 + $0x3] sm:$0x1] %vm401_vm11, %v619_v59  ;;  %vm518_vm11 = vcmask 967408   ;;  %v1067_v59 = vld [vmem:[%s2201_s7 + $0x10] sm:$0xff] }
 0x19d   :  { %634 = vst.msk [vmem:[#allocation3 + $0x3] sm:$0x1] %vm415_vm13, %v632_v60  ;;  %vm741_vm13 = vcmask 769024   ;;  %v1496_v60 = vpack.c.bf16 %v1066_v58, %v1065_v57 }
 0x19f   :  { %v455_v61 = vpop.permute.xlu1 %454 }
 0x1a0   :  { %v427_v62 = vpop.permute.xlu0 %426  ;;  %v456_v63 = vrot.slane %v455_v61, 6 }
 0x1a1   :  { %430 = vst.msk [vmem:[#allocation3 + $0x2] sm:$0x1] %vm429_vm14, %v427_v62  ;;  %v982_v62 = vld [vmem:[%s2199_s5 + $0x70] sm:$0xff] }
 0x1a2   :  { %v458_v3 = vsel %vm457_vm1, %v456_v63, %v455_v61  ;;  %v1068_v61 = vld [vmem:[%s2201_s7 + $0x18] sm:$0xff]  ;;  %vm1087_vm1 = vcmask 1043456  }
 0x1a3   :  { %v671_v0 = vpop.permute.xlu1 %670  ;;  %v1499_v63 = vpack.c.bf16 %v1068_v61, %v1067_v59 }
 0x1a4   :  { %v441_v2 = vpop.permute.xlu0 %440  ;;  %v672_v5 = vrot.slane %v671_v0, 6 }
 0x1a5   :  { %444 = vst.msk [vmem:[#allocation3 + $0x2] sm:$0x1] %vm443_vm2, %v441_v2 }
 0x1a6   :  { %463 = vst.msk [vmem:[#allocation3 + $0x2] sm:$0x5] %vm2070_vm3, %v458_v3  ;;  %v674_v8 = vsel %vm673_vm5, %v672_v5, %v671_v0  ;;  %v1069_v0 = vld [vmem:[%s2201_s7 + $0x20] sm:$0xff]  ;;  %v1071_v3 = vld [vmem:[%s2201_s7 + $0x30] sm:$0xff] }
 0x1a7   :  { %v645_v4 = vpop.permute.xlu1 %644  ;;  %v1502_v2 = vpack.c.bf16 %v1070_v1, %v1069_v0 }
 0x1a8   :  { %647 = vst.msk [vmem:[#allocation3 + $0x3] sm:$0x1] %vm429_vm14, %v645_v4  ;;  %v474_v6 = vpop.permute.xlu0 %473  ;;  %vm824_vm14 = vcmask 130048   ;;  %v1072_v4 = vld [vmem:[%s2201_s7 + $0x38] sm:$0xff] }
 0x1a9   :  { %477 = vst.msk [vmem:[#allocation3 + $0x4] sm:$0x1] %vm476_vm4, %v474_v6  ;;  %v1505_v5 = vpack.c.bf16 %v1072_v4, %v1071_v3 }
 0x1ab   :  { %v658_v7 = vpop.permute.xlu1 %657 }
 0x1ac   :  { %660 = vst.msk [vmem:[#allocation3 + $0x3] sm:$0x1] %vm443_vm2, %v658_v7  ;;  %v488_v9 = vpop.permute.xlu0 %487  ;;  %vm1083_vm2 = vcmask 687104  }
 0x1ad   :  { %676 = vst.msk [vmem:[#allocation3 + $0x3] sm:$0x5] %vm2070_vm3, %v674_v8  ;;  %v1215_v8 = vld [vmem:[%s2198_s4] ss:$0 sm:$0xff]  ;;  %vm1161_vm3 = vcmask 74752  }
 0x1ae   :  { %491 = vst.msk [vmem:[#allocation3 + $0x4] sm:$0x1] %vm490_vm6, %v488_v9 }
 0x1af   :  { %v687_v10 = vpop.permute.xlu1 %686 }
 0x1b0   :  { %689 = vst.msk [vmem:[#allocation3 + $0x5] sm:$0x1] %vm476_vm4, %v687_v10  ;;  %v700_v11 = vpop.permute.xlu0 %699 }
 0x1b1   :  { %702 = vst.msk [vmem:[#allocation3 + $0x5] sm:$0x1] %vm490_vm6, %v700_v11 }
 0x1b3   :  { %v530_v12 = vpop.permute.xlu1 %529 }
 0x1b4   :  { %v502_v13 = vpop.permute.xlu0 %501  ;;  %v531_v14 = vrot.slane %v530_v12, 6 }
 0x1b5   :  { %505 = vst.msk [vmem:[#allocation3 + $0x4] sm:$0x1] %vm504_vm7, %v502_v13 }
 0x1b6   :  { %v533_v17 = vsel %vm532_vm10, %v531_v14, %v530_v12 }
 0x1b7   :  { %v739_v15 = vpop.permute.xlu1 %738 }
 0x1b8   :  { %v516_v16 = vpop.permute.xlu0 %515  ;;  %v740_v19 = vrot.slane %v739_v15, 6 }
 0x1b9   :  { %519 = vst.msk [vmem:[#allocation3 + $0x4] sm:$0x1] %vm518_vm11, %v516_v16 }
 0x1ba   :  { %538 = vst.msk [vmem:[#allocation3 + $0x4] sm:$0x5] %vm537_vm12, %v533_v17  ;;  %v742_v24 = vsel %vm741_vm13, %v740_v19, %v739_v15  ;;  %v1073_v15 = vld [vmem:[%s2201_s7 + $0x40] sm:$0xff]  ;;  %v1075_v17 = vld [vmem:[%s2201_s7 + $0x50] sm:$0xf] }
 0x1bb   :  { %v713_v18 = vpop.permute.xlu1 %712 }
 0x1bc   :  { %715 = vst.msk [vmem:[#allocation3 + $0x5] sm:$0x1] %vm504_vm7, %v713_v18  ;;  %v1217_v18 = vld [vmem:[%s2200_s6] ss:$0 sm:$0xff] }
 0x1bf   :  { %v726_v23 = vpop.permute.xlu1 %725 }
 0x1c0   :  { %728 = vst.msk [vmem:[#allocation3 + $0x5] sm:$0x1] %vm518_vm11, %v726_v23  ;;  %v1219_v23 = vld [vmem:[%s2202_s8] ss:$0 sm:$0xff] }
 0x1c1   :  { %744 = vst.msk [vmem:[#allocation3 + $0x5] sm:$0x5] %vm537_vm12, %v742_v24 }
 0x1c8   :  { %v745_v29 = vld [vmem:[#allocation3] sm:$0xff] }
 0x1c9   :  { %v804_v32 = vcombine.high %v745_v29, %v745_v29  ;;  %v811_v33 = vrot.slane %v745_v29, %v810_v28 }
 0x1cb   :  { %v819_v34 = vcombine.high %v811_v33, %v811_v33  ;;  %v818_v35 = vrot.slane %v804_v32, %v810_v28 }
 0x1cd   :  { %891 = vmatprep.mubr.f32.mxu0 %v819_v34  ;;  %v820_v39 = vcombine.high %v818_v35, %v818_v35 }
 0x1ce   :  { %892 = vmatmul.mubr.f32.vlgmr.msra.gmra.mrb[4].mxu0 %v811_v33 }
 0x1cf   :  { %1216 = vmatprep.mubr.msk.f32.mxu1 %vm824_vm14, %v820_v39  ;;  %1476 = vmatpush3.bf16.msra.mxu0 %v1475_v36 }
 0x1d0   :  { %962 = vmatmul.mubr.f32.vlgmr.msra.gmra.mrb[4].mxu1 %v818_v35  ;;  %1477 = vmatprep.subr.bf16.mxu0 %v1569_v25 }
 0x1d1   :  { %1315 = vmatprep.mubr.msk.f32.mxu0 %vm1577_vm15, %v1578_v56  ;;  %1340 = vmatprep.mubr.msk.f32.mxu1 %vm1577_vm15, %v1578_v56 }
 0x1d2   :  { %1497 = vmatpush3.bf16.msra.mxu1 %v1496_v60 }
 0x1d3   :  { %1479 = vmatpush3.bf16.msra.mxu0 %v1478_v40  ;;  %1498 = vmatprep.subr.bf16.mxu1 %v1569_v25 }
 0x1d4   :  { %1480 = vmatprep.subr.bf16.mxu0 %v1569_v25 }
 0x1d6   :  { %1500 = vmatpush3.bf16.msra.mxu1 %v1499_v63 }
 0x1d7   :  { %1482 = vmatpush3.bf16.msra.mxu0 %v1481_v43  ;;  %1501 = vmatprep.subr.bf16.mxu1 %v1569_v25 }
 0x1d8   :  { %1483 = vmatprep.subr.bf16.mxu0 %v1569_v25 }
 0x1da   :  { %1503 = vmatpush3.bf16.msra.mxu1 %v1502_v2 }
 0x1db   :  { %1485 = vmatpush3.bf16.msra.mxu0 %v1484_v46  ;;  %1504 = vmatprep.subr.bf16.mxu1 %v1569_v25 }
 0x1dc   :  { %1486 = vmatprep.subr.bf16.mxu0 %v1569_v25 }
 0x1de   :  { %1506 = vmatpush3.bf16.msra.mxu1 %v1505_v5 }
 0x1df   :  { %1488 = vmatpush3.bf16.msra.mxu0 %v1487_v49  ;;  %1507 = vmatprep.subr.bf16.mxu1 %v1569_v25 }
 0x1e0   :  { %1489 = vmatprep.subr.bf16.mxu0 %v1569_v25 }
 0x1e3   :  { %1491 = vmatpush3.bf16.msra.mxu0 %v1490_v52 }
 0x1e4   :  { %1492 = vmatprep.subr.bf16.mxu0 %v1569_v25  ;;  %v1074_v25 = vld [vmem:[%s2201_s7 + $0x48] sm:$0xff]  ;;  %s1534_s7 = scalar_lea.vmem %s1170_s2, 32 }
 0x1e5   :  { %v1508_v16 = vpack.c.bf16 %v1074_v25, %v1073_v15  ;;  %p1535_p0 = scmp.ne.s32.totalorder %s1170_s2, %s1534_s7  ;;  %p1540_p2 = scmp.lt.s32.totalorder %s1534_s7, %s1534_s7 }
 0x1e7   :  { %1494 = vmatpush3.bf16.msra.mxu0 %v1493_v55  ;;  %1509 = vmatpush3.bf16.msra.mxu1 %v1508_v16  ;;  %p1541_p3 = por %p1540_p2, %p1539_p1 }
 0x1e8   :  { %1313 = vmatprep.subr.mxu0 %v1578_v56  ;;  %1338 = vmatprep.subr.mxu1 %v1578_v56 }
 0x1e9   :  { %p1542_p4 = pnand %p1541_p3, %p1535_p0 }
 0x1eb   :  { %1314 = vmatpush3.msra.mxu0 %v982_v62  ;;  %1339 = vmatpush3.msk.msra.mxu1 %vm1087_vm1, %v1075_v17 }
 0x2a1   :  { %v1254_v6 = vpop.f32.mrb[4].mxu0 }
 0x2a2   :  { %v1255_v7 = vpop.f32.mrb[5].mxu0 }
 0x2a3   :  { %v1256_v9 = vadd.f32 %v1255_v7, %v1254_v6  ;;  %v963_v10 = vpop.f32.mrb[4].mxu1 }
 0x2a4   :  { %v965_v11 = vpop.f32.mrb[5].mxu1 }
 0x2a5   :  { %v894_v12 = vadd.f32 %v1256_v9, %v1215_v8 }
 0x2a7   :  { %v964_v13 = vadd.f32 %v963_v10, %v894_v12 }
 0x2a9   :  { %v967_v14 = vmax.f32 %v964_v13, 0.0 }
 0x2ab   :  { %1316 = vmatmul.mubr.msk.f32.vlgmr.msra.gmra.mrb[6].mxu0 %vm990_vm0, %v967_v14 }
 0x37e   :  { %v1060_v19 = vpop.f32.mrb[6].mxu0 }
 0x37f   :  { %v1061_v20 = vadd.f32 %v1217_v18, %v1060_v19  ;;  %v1317_v21 = vpop.f32.mrb[7].mxu0 }
 0x381   :  { %v1064_v22 = vmax.f32 %v1061_v20, 0.0 }
 0x383   :  { %1341 = vmatmul.mubr.msk.f32.vlgmr.msra.gmra.mrb[6].mxu1 %vm1083_vm2, %v1064_v22 }
 0x456   :  { %v1157_v24 = vpop.f32.mrb[6].mxu1 }
 0x457   :  { %v1158_v26 = vadd.f32 %v1219_v23, %v1157_v24  ;;  %v1342_v27 = vpop.f32.mrb[7].mxu1 }
 0x459   :  { %1162 = vst.msk [vmem:[#allocation4] sm:$0x3] %vm1161_vm3, %v1158_v26 }
 0x45a   :  { %1545 = shalt.err (!%p1542_p4)
}
 0x45b   :  { %s1546_s11 = scalar_lea.hbm %s2203_s9, 32 }
 0x45c   :  { %p1547_p5 = scmp.ne.s32.totalorder %s2203_s9, %s1546_s11  ;;  %p1550_p6 = scmp.lt.u32.totalorder %s1546_s11, %s2203_s9 }
 0x45e   :  { %p1552_p7 = pnand %p1550_p6, %p1547_p5 }
 0x460   :  { %1555 = shalt.err (!%p1552_p7)
}
 0x461   :  { %1172 = dma.vmem_to_hbm [thread:$0]  %s1170_s2, 32, %s2203_s9, [#allocation5]  }
 0x462   :  { %1556 = dma.done.wait [#allocation5], 32  }
 0x463   :  { %1557 = vsyncadd [#allocation5], 4294967264 }
 0x464   :  { %1176 = vsyncpa [#allocation5], 1 }

</bundles_post_ra>
